<compile_context>
chip_gen: v7x
topology: tpu7x:2x2x1
jax: 0.10.0
libtpu: 0.0.40
codegen_flags: <defaults>
</compile_context>

<pallas_src>
import functools
import math

import jax
import jax.numpy as jnp
from jax.experimental import pallas as pl
from jax.experimental.pallas import tpu as pltpu

# ---- mini-BERT config (small shapes consistent with the module's forward) ----
BATCH = 2
SEQ = 8
HIDDEN = 32
NUM_HEADS = 2
HEAD_DIM = HIDDEN // NUM_HEADS
INTERMEDIATE = 64
NUM_LAYERS = 2
VOCAB = 128
MAX_POS = 16
N_CLASSES = 3
LN_EPS = 1e-12

# lane-dense padded widths (multiples of 128) for matmul outputs that do not feed a
# residual / LayerNorm (those must stay at the true hidden width for exact statistics)
QKV_PAD = 128    # 3*HIDDEN = 96  -> 128
FF_PAD = 128     # INTERMEDIATE = 64 -> 128
POOL_PAD = 128   # HIDDEN = 32 -> 128 (pooler output)
LANE = 128       # N_CLASSES = 3 -> 128 (classifier output)


def _layernorm(x, gamma, beta):
    mu = jnp.mean(x, axis=-1, keepdims=True)
    var = jnp.mean((x - mu) ** 2, axis=-1, keepdims=True)
    return (x - mu) * jax.lax.rsqrt(var + LN_EPS) * gamma + beta


def _gelu(x):
    # tanh-approximation GELU (BERT's exact-erf GELU differs by <1e-3)
    c = math.sqrt(2.0 / math.pi)
    return 0.5 * x * (1.0 + jnp.tanh(c * (x + 0.044715 * x * x * x)))


# --------------------------- single fused forward kernel ----------------------
def fused_bert_kernel(
    x_ref,        # (B, S, H)        word+pos+type embedding sum (pre-LN)
    addmask_ref,  # (B, S, S)        additive mask: 0 keep, -1e9 pad (materialized once)
    emb_ln_ref,   # (2, H)           embedding LayerNorm gamma / beta
    w_qkv_ref,    # (L, H+1, 128)    packed [Wq | Wk | Wv | 0-pad]; last row = bias
    w_o_ref,      # (L, H+1, H)      attention output projection; last row = bias
    w_ff1_ref,    # (L, H+1, 128)    FFN in (cols >= I zero); last row = bias
    w_ff2_ref,    # (L, 129, H)      FFN out (rows >= I zero); last row = bias
    ln_ref,       # (L, 4, H)        [g_attn, b_attn, g_ffn, b_ffn]
    pool_wb_ref,  # (H+1, 128)       pooler (cols >= H zero); last row = bias
    cls_wb_ref,   # (129, 128)       classifier (rows >= H and cols >= n_classes zero)
    out_ref,      # (B, 128)         padded logits (lane-dense store)
    *,
    batched_heads,
):
    B, S, H, NH, HD = BATCH, SEQ, HIDDEN, NUM_HEADS, HEAD_DIM
    M = B * S
    scale = 1.0 / math.sqrt(HD)

    # (B,S,H) -> (B*S,H): merges major dims only (S == 8 is sublane-tile aligned) => free view.
    x = x_ref[...].reshape(M, H)
    emb_ln = emb_ln_ref[...]
    x = _layernorm(x, emb_ln[0:1, :], emb_ln[1:2, :])

    addmask = addmask_ref[...]                                   # (B, S, S)
    if batched_heads:
        # hoisted ONCE: broadcast over heads outside the unrolled layer loop
        addmask4 = jnp.broadcast_to(addmask[:, None, :, :], (B, NH, S, S))

    for l in range(NUM_LAYERS):   # static unroll (tiny L); use a layer grid at real scale
        w_qkv = w_qkv_ref[l]      # (H+1, 128)
        w_o = w_o_ref[l]          # (H+1, H)
        w_f1 = w_ff1_ref[l]       # (H+1, 128)
        w_f2 = w_ff2_ref[l]       # (129, H)
        ln = ln_ref[l]            # (4, H)

        # fused QKV projection, lane-dense 128-wide output (cols 96:128 are zeros)
        qkv = (jnp.dot(x, w_qkv[:H, :], preferred_element_type=jnp.float32)
               + w_qkv[H:H + 1, :])                              # (M, 128)

        if batched_heads:
            # ---- all heads in one einsum pair + ONE output projection ----
            q4 = qkv[:, 0 * H:1 * H].reshape(B, S, NH, HD)
            k4 = qkv[:, 1 * H:2 * H].reshape(B, S, NH, HD)
            v4 = qkv[:, 2 * H:3 * H].reshape(B, S, NH, HD)

            s = jnp.einsum('bqhd,bkhd->bhqk', q4, k4,
                           preferred_element_type=jnp.float32) * scale + addmask4
            s = s - jnp.max(s, axis=-1, keepdims=True)
            p = jnp.exp(s)
            p = p * pl.reciprocal(jnp.sum(p, axis=-1, keepdims=True), approx=True)
            ctx = jnp.einsum('bhqk,bkhd->bhqd', p, v4,
                             preferred_element_type=jnp.float32)            # (B,NH,S,HD)
            # single output projection over (head, head_dim) against the full Wo
            attn = jnp.einsum('bhqd,hdo->bqo', ctx, w_o[:H, :].reshape(NH, HD, H),
                              preferred_element_type=jnp.float32
                              ).reshape(M, H) + w_o[H:H + 1, :]
        else:
            # ---- fallback: per-head loop (identical math, 3-D single-batch einsums) ----
            attn = w_o[H:H + 1, :]        # start from output bias, broadcasts to (M,H)
            for h in range(NH):
                qh = qkv[:, h * HD:(h + 1) * HD].reshape(B, S, HD)
                kh = qkv[:, H + h * HD:H + (h + 1) * HD].reshape(B, S, HD)
                vh = qkv[:, 2 * H + h * HD:2 * H + (h + 1) * HD].reshape(B, S, HD)
                s = jnp.einsum('bqd,bkd->bqk', qh, kh,
                               preferred_element_type=jnp.float32) * scale + addmask
                s = s - jnp.max(s, axis=-1, keepdims=True)
                p = jnp.exp(s)
                p = p * pl.reciprocal(jnp.sum(p, axis=-1, keepdims=True), approx=True)
                ctx = jnp.einsum('bqk,bkd->bqd', p, vh,
                                 preferred_element_type=jnp.float32)
                attn = attn + jnp.dot(ctx.reshape(M, HD), w_o[h * HD:(h + 1) * HD, :],
                                      preferred_element_type=jnp.float32)

        h1 = _layernorm(x + attn, ln[0:1, :], ln[1:2, :])

        # FFN with lane-dense 128-wide intermediate (cols >= I are exactly zero,
        # gelu(0)=0 and the corresponding w_ff2 rows are zero -> result exact)
        ff = (jnp.dot(h1, w_f1[:H, :], preferred_element_type=jnp.float32)
              + w_f1[H:H + 1, :])                                # (M, 128)
        ff = _gelu(ff)
        ff = (jnp.dot(ff, w_f2[:FF_PAD, :], preferred_element_type=jnp.float32)
              + w_f2[FF_PAD:FF_PAD + 1, :])                      # (M, H)
        x = _layernorm(h1 + ff, ln[2:3, :], ln[3:4, :])

    # [CLS] token: free static slice of sublane index 0 (replaces one-hot selector matmul)
    cls = x.reshape(B, S, H)[:, 0, :]                            # (B, H)

    pool_wb = pool_wb_ref[...]
    pooled = jnp.tanh(jnp.dot(cls, pool_wb[:H, :], preferred_element_type=jnp.float32)
                      + pool_wb[H:H + 1, :])                     # (B, 128) lane-dense

    # nn.Dropout(p=0.3) is the identity at inference time.
    cls_wb = cls_wb_ref[...]
    out_ref[...] = (jnp.dot(pooled, cls_wb[:POOL_PAD, :], preferred_element_type=jnp.float32)
                    + cls_wb[POOL_PAD:POOL_PAD + 1, :])          # (B, 128) lane-dense store


def _fused_call(batched_heads):
    kernel = functools.partial(fused_bert_kernel, batched_heads=batched_heads)
    vmem = lambda: pl.BlockSpec(memory_space=pltpu.MemorySpace.VMEM)
    return pl.pallas_call(
        kernel,
        out_shape=jax.ShapeDtypeStruct((BATCH, LANE), jnp.float32),
        in_specs=[vmem() for _ in range(10)],
        out_specs=vmem(),
        compiler_params=pltpu.CompilerParams(vmem_limit_bytes=32 * 1024 * 1024),
    )


def run_fused_forward(params, emb, addmask):
    args = (emb, addmask,
            params["emb_ln"], params["w_qkv"], params["w_o"],
            params["w_ff1"], params["w_ff2"], params["ln"],
            params["pool_wb"], params["cls_wb"])
    try:
        logits_pad = _fused_call(batched_heads=True)(*args)
    except Exception:
        # Fallback for Mosaic builds that cannot lower dot_general with two batch
        # dimensions: per-head-loop formulation (identical math, proven lowering path).
        logits_pad = _fused_call(batched_heads=False)(*args)
    return logits_pad[:, :N_CLASSES]


# ------------------------------- parameters ----------------------------------
def init_params(key):
    std = 0.02
    H, I, L = HIDDEN, INTERMEDIATE, NUM_LAYERS
    ks = iter(jax.random.split(key, 20))
    nrm = lambda shape: (std * jax.random.normal(next(ks), shape)).astype(jnp.float32)

    w_qkv = jnp.zeros((L, H + 1, QKV_PAD), jnp.float32)
    w_qkv = w_qkv.at[:, :H, :3 * H].set(nrm((L, H, 3 * H)))
    w_qkv = w_qkv.at[:, H, :3 * H].set(nrm((L, 3 * H)))

    w_o = jnp.concatenate([nrm((L, H, H)), nrm((L, 1, H))], axis=1)        # (L, H+1, H)

    w_ff1 = jnp.zeros((L, H + 1, FF_PAD), jnp.float32)
    w_ff1 = w_ff1.at[:, :H, :I].set(nrm((L, H, I)))
    w_ff1 = w_ff1.at[:, H, :I].set(nrm((L, I)))

    w_ff2 = jnp.zeros((L, FF_PAD + 1, H), jnp.float32)
    w_ff2 = w_ff2.at[:, :I, :].set(nrm((L, I, H)))
    w_ff2 = w_ff2.at[:, FF_PAD, :].set(nrm((L, H)))

    g = jnp.ones((L, 1, H), jnp.float32)
    z = jnp.zeros((L, 1, H), jnp.float32)
    ln = jnp.concatenate([g, z, g, z], axis=1)                             # (L, 4, H)

    pool_wb = jnp.zeros((H + 1, POOL_PAD), jnp.float32)
    pool_wb = pool_wb.at[:H, :H].set(nrm((H, H)))
    pool_wb = pool_wb.at[H, :H].set(nrm((H,)))

    cls_wb = jnp.zeros((POOL_PAD + 1, LANE), jnp.float32)
    cls_wb = cls_wb.at[:H, :N_CLASSES].set(nrm((H, N_CLASSES)))
    cls_wb = cls_wb.at[POOL_PAD, :N_CLASSES].set(nrm((N_CLASSES,)))

    return {
        "word_emb": nrm((VOCAB, H)),
        "pos_emb": nrm((MAX_POS, H)),
        "type_emb": nrm((2, H)),
        "emb_ln": jnp.concatenate([jnp.ones((1, H), jnp.float32),
                                   jnp.zeros((1, H), jnp.float32)], axis=0),  # (2, H)
        "w_qkv": w_qkv, "w_o": w_o, "w_ff1": w_ff1, "w_ff2": w_ff2, "ln": ln,
        "pool_wb": pool_wb, "cls_wb": cls_wb,
    }


# --------------------------------- forward -----------------------------------
def sentiment_classifier_forward(params, input_ids, attention_mask):
    # Embedding lookup + sum (gather is glue, done in plain JAX).
    positions = jnp.arange(SEQ)
    emb = (params["word_emb"][input_ids]
           + params["pos_emb"][positions][None, :, :]
           + params["type_emb"][jnp.zeros_like(input_ids)]).astype(jnp.float32)

    # Additive mask materialized ONCE at (B, S, S): 0.0 keep, -1e9 pad.
    addmask = jnp.broadcast_to(
        ((1.0 - attention_mask.astype(jnp.float32)) * -1e9)[:, None, :],
        (BATCH, SEQ, SEQ))

    return run_fused_forward(params, emb, addmask)


# ----------------------- pure-JAX reference (for checking) -------------------
def reference_forward(params, input_ids, attention_mask):
    H, I, NH, HD = HIDDEN, INTERMEDIATE, NUM_HEADS, HEAD_DIM
    x = (params["word_emb"][input_ids]
         + params["pos_emb"][jnp.arange(SEQ)][None, :, :]
         + params["type_emb"][jnp.zeros_like(input_ids)]).astype(jnp.float32)
    x = _layernorm(x, params["emb_ln"][0], params["emb_ln"][1])
    addmask = ((1.0 - attention_mask.astype(jnp.float32)) * -1e9)[:, None, None, :]
    for l in range(NUM_LAYERS):
        wqkv = params["w_qkv"][l, :H, :3 * H]; bqkv = params["w_qkv"][l, H, :3 * H]
        wo = params["w_o"][l, :H]; bo = params["w_o"][l, H]
        w1 = params["w_ff1"][l, :H, :I]; b1 = params["w_ff1"][l, H, :I]
        w2 = params["w_ff2"][l, :I]; b2 = params["w_ff2"][l, FF_PAD]
        g1, be1, g2, be2 = params["ln"][l]
        qkv = x @ wqkv + bqkv
        q, k, v = jnp.split(qkv, 3, axis=-1)
        q = q.reshape(BATCH, SEQ, NH, HD).transpose(0, 2, 1, 3)
        k = k.reshape(BATCH, SEQ, NH, HD).transpose(0, 2, 1, 3)
        v = v.reshape(BATCH, SEQ, NH, HD).transpose(0, 2, 1, 3)
        s = (q @ k.transpose(0, 1, 3, 2)) / math.sqrt(HD) + addmask
        p = jax.nn.softmax(s, axis=-1)
        ctx = (p @ v).transpose(0, 2, 1, 3).reshape(BATCH, SEQ, H)
        x = _layernorm(x + ctx @ wo + bo, g1, be1)
        ff = _gelu(x @ w1 + b1) @ w2 + b2
        x = _layernorm(x + ff, g2, be2)
    cls = x[:, 0, :]
    pooled = jnp.tanh(cls @ params["pool_wb"][:H, :H] + params["pool_wb"][H, :H])
    return pooled @ params["cls_wb"][:H, :N_CLASSES] + params["cls_wb"][POOL_PAD, :N_CLASSES]


if __name__ == "__main__":
    key = jax.random.PRNGKey(0)
    pkey, ikey = jax.random.split(key, 2)

    params = init_params(pkey)
    input_ids = jax.random.randint(ikey, (BATCH, SEQ), 0, VOCAB, dtype=jnp.int32)
    # first 6 tokens valid, last 2 padded for batch element 1 (exercise the mask)
    attention_mask = jnp.array([[1] * SEQ, [1] * 6 + [0] * 2], dtype=jnp.int32)

    logits = sentiment_classifier_forward(params, input_ids, attention_mask)
    logits = jax.block_until_ready(logits)
    ref = reference_forward(params, input_ids, attention_mask)

    assert logits.shape == (BATCH, N_CLASSES)
    assert bool(jnp.all(jnp.isfinite(logits)))
    # approx-reciprocal softmax + matmul precision differences => loose tolerance
    assert bool(jnp.allclose(logits, ref, atol=2e-2, rtol=2e-2))
    print("KERNEL_OK")
</pallas_src>

<mosaic_0001>
module attributes {stable_mosaic.version = 11 : i64} {
  func.func @fused_bert_kernel(%arg0: memref<2x8x32xf32, #tpu.memory_space<vmem>>, %arg1: memref<2x8x8xf32, #tpu.memory_space<vmem>>, %arg2: memref<2x32xf32, #tpu.memory_space<vmem>>, %arg3: memref<2x33x128xf32, #tpu.memory_space<vmem>>, %arg4: memref<2x33x32xf32, #tpu.memory_space<vmem>>, %arg5: memref<2x33x128xf32, #tpu.memory_space<vmem>>, %arg6: memref<2x129x32xf32, #tpu.memory_space<vmem>>, %arg7: memref<2x4x32xf32, #tpu.memory_space<vmem>>, %arg8: memref<33x128xf32, #tpu.memory_space<vmem>>, %arg9: memref<129x128xf32, #tpu.memory_space<vmem>>, %arg10: memref<2x128xf32, #tpu.memory_space<vmem>>) attributes {dimension_semantics = [], scalar_prefetch = 0 : i64, scratch_operands = 0 : i64, tpu.core_type = #tpu.core_type<tc>} {
    %c0 = arith.constant 0 : index
    %c0_0 = arith.constant 0 : index
    %c0_1 = arith.constant 0 : index
    %0 = vector.load %arg0[%c0, %c0_0, %c0_1] : memref<2x8x32xf32, #tpu.memory_space<vmem>>, vector<2x8x32xf32>
    %1 = vector.shape_cast %0 : vector<2x8x32xf32> to vector<16x32xf32>
    %c0_2 = arith.constant 0 : index
    %c0_3 = arith.constant 0 : index
    %2 = vector.load %arg2[%c0_2, %c0_3] : memref<2x32xf32, #tpu.memory_space<vmem>>, vector<2x32xf32>
    %3 = vector.extract_strided_slice %2 {offsets = [0, 0], sizes = [1, 32], strides = [1, 1]} : vector<2x32xf32> to vector<1x32xf32>
    %4 = vector.extract_strided_slice %2 {offsets = [1, 0], sizes = [1, 32], strides = [1, 1]} : vector<2x32xf32> to vector<1x32xf32>
    %cst = arith.constant dense<0.000000e+00> : vector<16xf32>
    %5 = vector.multi_reduction <add>, %1, %cst [1] : vector<16x32xf32> to vector<16xf32>
    %6 = vector.shape_cast %5 : vector<16xf32> to vector<16x1xf32>
    %cst_4 = arith.constant 3.200000e+01 : f32
    %7 = vector.broadcast %cst_4 : f32 to vector<16x1xf32>
    %8 = arith.divf %6, %7 : vector<16x1xf32>
    %9 = vector.broadcast %8 : vector<16x1xf32> to vector<16x32xf32>
    %10 = arith.subf %1, %9 : vector<16x32xf32>
    %11 = arith.mulf %10, %10 : vector<16x32xf32>
    %cst_5 = arith.constant dense<0.000000e+00> : vector<16xf32>
    %12 = vector.multi_reduction <add>, %11, %cst_5 [1] : vector<16x32xf32> to vector<16xf32>
    %13 = vector.shape_cast %12 : vector<16xf32> to vector<16x1xf32>
    %cst_6 = arith.constant 3.200000e+01 : f32
    %14 = vector.broadcast %cst_6 : f32 to vector<16x1xf32>
    %15 = arith.divf %13, %14 : vector<16x1xf32>
    %16 = vector.broadcast %8 : vector<16x1xf32> to vector<16x32xf32>
    %17 = arith.subf %1, %16 : vector<16x32xf32>
    %cst_7 = arith.constant 9.99999996E-13 : f32
    %18 = vector.broadcast %cst_7 : f32 to vector<16x1xf32>
    %19 = arith.addf %15, %18 : vector<16x1xf32>
    %20 = math.rsqrt %19 : vector<16x1xf32>
    %21 = vector.broadcast %20 : vector<16x1xf32> to vector<16x32xf32>
    %22 = arith.mulf %17, %21 : vector<16x32xf32>
    %23 = vector.broadcast %3 : vector<1x32xf32> to vector<16x32xf32>
    %24 = arith.mulf %22, %23 : vector<16x32xf32>
    %25 = vector.broadcast %4 : vector<1x32xf32> to vector<16x32xf32>
    %26 = arith.addf %24, %25 : vector<16x32xf32>
    %c0_8 = arith.constant 0 : index
    %c0_9 = arith.constant 0 : index
    %c0_10 = arith.constant 0 : index
    %27 = vector.load %arg1[%c0_8, %c0_9, %c0_10] : memref<2x8x8xf32, #tpu.memory_space<vmem>>, vector<2x8x8xf32>
    %c0_11 = arith.constant 0 : index
    %c0_12 = arith.constant 0 : index
    %c0_13 = arith.constant 0 : index
    %28 = vector.load %arg3[%c0_11, %c0_12, %c0_13] : memref<2x33x128xf32, #tpu.memory_space<vmem>>, vector<1x33x128xf32>
    %29 = vector.shape_cast %28 : vector<1x33x128xf32> to vector<33x128xf32>
    %c0_14 = arith.constant 0 : index
    %c0_15 = arith.constant 0 : index
    %c0_16 = arith.constant 0 : index
    %30 = vector.load %arg4[%c0_14, %c0_15, %c0_16] : memref<2x33x32xf32, #tpu.memory_space<vmem>>, vector<1x33x32xf32>
    %31 = vector.shape_cast %30 : vector<1x33x32xf32> to vector<33x32xf32>
    %c0_17 = arith.constant 0 : index
    %c0_18 = arith.constant 0 : index
    %c0_19 = arith.constant 0 : index
    %32 = vector.load %arg5[%c0_17, %c0_18, %c0_19] : memref<2x33x128xf32, #tpu.memory_space<vmem>>, vector<1x33x128xf32>
    %33 = vector.shape_cast %32 : vector<1x33x128xf32> to vector<33x128xf32>
    %c0_20 = arith.constant 0 : index
    %c0_21 = arith.constant 0 : index
    %c0_22 = arith.constant 0 : index
    %34 = vector.load %arg6[%c0_20, %c0_21, %c0_22] : memref<2x129x32xf32, #tpu.memory_space<vmem>>, vector<1x129x32xf32>
    %35 = vector.shape_cast %34 : vector<1x129x32xf32> to vector<129x32xf32>
    %c0_23 = arith.constant 0 : index
    %c0_24 = arith.constant 0 : index
    %c0_25 = arith.constant 0 : index
    %36 = vector.load %arg7[%c0_23, %c0_24, %c0_25] : memref<2x4x32xf32, #tpu.memory_space<vmem>>, vector<1x4x32xf32>
    %37 = vector.shape_cast %36 : vector<1x4x32xf32> to vector<4x32xf32>
    %38 = vector.extract_strided_slice %29 {offsets = [0, 0], sizes = [32, 128], strides = [1, 1]} : vector<33x128xf32> to vector<32x128xf32>
    %cst_26 = arith.constant dense<0.000000e+00> : vector<16x128xf32>
    %39 = tpu.matmul %26, %38, %cst_26 {dimension_numbers = #tpu.dot_dimension_numbers<[1], [0], [0], [1], [0, 0, 1, 1], [], []>} : vector<16x32xf32>, vector<32x128xf32>, vector<16x128xf32> -> vector<16x128xf32>
    %40 = vector.extract_strided_slice %29 {offsets = [32, 0], sizes = [1, 128], strides = [1, 1]} : vector<33x128xf32> to vector<1x128xf32>
    %41 = vector.broadcast %40 : vector<1x128xf32> to vector<16x128xf32>
    %42 = arith.addf %39, %41 : vector<16x128xf32>
    %43 = vector.extract_strided_slice %31 {offsets = [32, 0], sizes = [1, 32], strides = [1, 1]} : vector<33x32xf32> to vector<1x32xf32>
    %44 = vector.extract_strided_slice %42 {offsets = [0, 0], sizes = [16, 16], strides = [1, 1]} : vector<16x128xf32> to vector<16x16xf32>
    %45 = vector.shape_cast %44 : vector<16x16xf32> to vector<2x8x16xf32>
    %46 = vector.extract_strided_slice %42 {offsets = [0, 32], sizes = [16, 16], strides = [1, 1]} : vector<16x128xf32> to vector<16x16xf32>
    %47 = vector.shape_cast %46 : vector<16x16xf32> to vector<2x8x16xf32>
    %48 = vector.extract_strided_slice %42 {offsets = [0, 64], sizes = [16, 16], strides = [1, 1]} : vector<16x128xf32> to vector<16x16xf32>
    %49 = vector.shape_cast %48 : vector<16x16xf32> to vector<2x8x16xf32>
    "tpu.trace_start"() <{level = 10 : i32, message = "bqd,bkd->bqk"}> : () -> ()
    %cst_27 = arith.constant dense<0.000000e+00> : vector<2x8x8xf32>
    %50 = tpu.matmul %45, %47, %cst_27 {dimension_numbers = #tpu.dot_dimension_numbers<[2], [2], [1], [1], [0, 0, 0, 1, 1, 1], [0], [0]>} : vector<2x8x16xf32>, vector<2x8x16xf32>, vector<2x8x8xf32> -> vector<2x8x8xf32>
    "tpu.trace_stop"() : () -> ()
    %cst_28 = arith.constant 2.500000e-01 : f32
    %51 = vector.broadcast %cst_28 : f32 to vector<2x8x8xf32>
    %52 = arith.mulf %50, %51 : vector<2x8x8xf32>
    %53 = arith.addf %52, %27 : vector<2x8x8xf32>
    %cst_29 = arith.constant dense<0xFF800000> : vector<2x8xf32>
    %54 = vector.multi_reduction <maximumf>, %53, %cst_29 [2] : vector<2x8x8xf32> to vector<2x8xf32>
    %55 = vector.shape_cast %54 : vector<2x8xf32> to vector<2x8x1xf32>
    %56 = vector.broadcast %55 : vector<2x8x1xf32> to vector<2x8x8xf32>
    %57 = arith.subf %53, %56 : vector<2x8x8xf32>
    %58 = math.exp %57 : vector<2x8x8xf32>
    %cst_30 = arith.constant dense<0.000000e+00> : vector<2x8xf32>
    %59 = vector.multi_reduction <add>, %58, %cst_30 [2] : vector<2x8x8xf32> to vector<2x8xf32>
    %60 = vector.shape_cast %59 : vector<2x8xf32> to vector<2x8x1xf32>
    %61 = tpu.reciprocal %60 {approx = true} : vector<2x8x1xf32> -> vector<2x8x1xf32>
    %62 = vector.broadcast %61 : vector<2x8x1xf32> to vector<2x8x8xf32>
    %63 = arith.mulf %58, %62 : vector<2x8x8xf32>
    "tpu.trace_start"() <{level = 10 : i32, message = "bqk,bkd->bqd"}> : () -> ()
    %cst_31 = arith.constant dense<0.000000e+00> : vector<2x8x16xf32>
    %64 = tpu.matmul %63, %49, %cst_31 {dimension_numbers = #tpu.dot_dimension_numbers<[2], [1], [1], [2], [0, 0, 0, 1, 1, 2], [0], [0]>} : vector<2x8x8xf32>, vector<2x8x16xf32>, vector<2x8x16xf32> -> vector<2x8x16xf32>
    "tpu.trace_stop"() : () -> ()
    %65 = vector.shape_cast %64 : vector<2x8x16xf32> to vector<16x16xf32>
    %66 = vector.extract_strided_slice %31 {offsets = [0, 0], sizes = [16, 32], strides = [1, 1]} : vector<33x32xf32> to vector<16x32xf32>
    %cst_32 = arith.constant dense<0.000000e+00> : vector<16x32xf32>
    %67 = tpu.matmul %65, %66, %cst_32 {dimension_numbers = #tpu.dot_dimension_numbers<[1], [0], [0], [1], [0, 0, 1, 1], [], []>} : vector<16x16xf32>, vector<16x32xf32>, vector<16x32xf32> -> vector<16x32xf32>
    %68 = vector.broadcast %43 : vector<1x32xf32> to vector<16x32xf32>
    %69 = arith.addf %68, %67 : vector<16x32xf32>
    %70 = vector.extract_strided_slice %42 {offsets = [0, 16], sizes = [16, 16], strides = [1, 1]} : vector<16x128xf32> to vector<16x16xf32>
    %71 = vector.shape_cast %70 : vector<16x16xf32> to vector<2x8x16xf32>
    %72 = vector.extract_strided_slice %42 {offsets = [0, 48], sizes = [16, 16], strides = [1, 1]} : vector<16x128xf32> to vector<16x16xf32>
    %73 = vector.shape_cast %72 : vector<16x16xf32> to vector<2x8x16xf32>
    %74 = vector.extract_strided_slice %42 {offsets = [0, 80], sizes = [16, 16], strides = [1, 1]} : vector<16x128xf32> to vector<16x16xf32>
    %75 = vector.shape_cast %74 : vector<16x16xf32> to vector<2x8x16xf32>
    "tpu.trace_start"() <{level = 10 : i32, message = "bqd,bkd->bqk"}> : () -> ()
    %cst_33 = arith.constant dense<0.000000e+00> : vector<2x8x8xf32>
    %76 = tpu.matmul %71, %73, %cst_33 {dimension_numbers = #tpu.dot_dimension_numbers<[2], [2], [1], [1], [0, 0, 0, 1, 1, 1], [0], [0]>} : vector<2x8x16xf32>, vector<2x8x16xf32>, vector<2x8x8xf32> -> vector<2x8x8xf32>
    "tpu.trace_stop"() : () -> ()
    %cst_34 = arith.constant 2.500000e-01 : f32
    %77 = vector.broadcast %cst_34 : f32 to vector<2x8x8xf32>
    %78 = arith.mulf %76, %77 : vector<2x8x8xf32>
    %79 = arith.addf %78, %27 : vector<2x8x8xf32>
    %cst_35 = arith.constant dense<0xFF800000> : vector<2x8xf32>
    %80 = vector.multi_reduction <maximumf>, %79, %cst_35 [2] : vector<2x8x8xf32> to vector<2x8xf32>
    %81 = vector.shape_cast %80 : vector<2x8xf32> to vector<2x8x1xf32>
    %82 = vector.broadcast %81 : vector<2x8x1xf32> to vector<2x8x8xf32>
    %83 = arith.subf %79, %82 : vector<2x8x8xf32>
    %84 = math.exp %83 : vector<2x8x8xf32>
    %cst_36 = arith.constant dense<0.000000e+00> : vector<2x8xf32>
    %85 = vector.multi_reduction <add>, %84, %cst_36 [2] : vector<2x8x8xf32> to vector<2x8xf32>
    %86 = vector.shape_cast %85 : vector<2x8xf32> to vector<2x8x1xf32>
    %87 = tpu.reciprocal %86 {approx = true} : vector<2x8x1xf32> -> vector<2x8x1xf32>
    %88 = vector.broadcast %87 : vector<2x8x1xf32> to vector<2x8x8xf32>
    %89 = arith.mulf %84, %88 : vector<2x8x8xf32>
    "tpu.trace_start"() <{level = 10 : i32, message = "bqk,bkd->bqd"}> : () -> ()
    %cst_37 = arith.constant dense<0.000000e+00> : vector<2x8x16xf32>
    %90 = tpu.matmul %89, %75, %cst_37 {dimension_numbers = #tpu.dot_dimension_numbers<[2], [1], [1], [2], [0, 0, 0, 1, 1, 2], [0], [0]>} : vector<2x8x8xf32>, vector<2x8x16xf32>, vector<2x8x16xf32> -> vector<2x8x16xf32>
    "tpu.trace_stop"() : () -> ()
    %91 = vector.shape_cast %90 : vector<2x8x16xf32> to vector<16x16xf32>
    %92 = vector.extract_strided_slice %31 {offsets = [16, 0], sizes = [16, 32], strides = [1, 1]} : vector<33x32xf32> to vector<16x32xf32>
    %cst_38 = arith.constant dense<0.000000e+00> : vector<16x32xf32>
    %93 = tpu.matmul %91, %92, %cst_38 {dimension_numbers = #tpu.dot_dimension_numbers<[1], [0], [0], [1], [0, 0, 1, 1], [], []>} : vector<16x16xf32>, vector<16x32xf32>, vector<16x32xf32> -> vector<16x32xf32>
    %94 = arith.addf %69, %93 : vector<16x32xf32>
    %95 = arith.addf %26, %94 : vector<16x32xf32>
    %96 = vector.extract_strided_slice %37 {offsets = [0, 0], sizes = [1, 32], strides = [1, 1]} : vector<4x32xf32> to vector<1x32xf32>
    %97 = vector.extract_strided_slice %37 {offsets = [1, 0], sizes = [1, 32], strides = [1, 1]} : vector<4x32xf32> to vector<1x32xf32>
    %cst_39 = arith.constant dense<0.000000e+00> : vector<16xf32>
    %98 = vector.multi_reduction <add>, %95, %cst_39 [1] : vector<16x32xf32> to vector<16xf32>
    %99 = vector.shape_cast %98 : vector<16xf32> to vector<16x1xf32>
    %cst_40 = arith.constant 3.200000e+01 : f32
    %100 = vector.broadcast %cst_40 : f32 to vector<16x1xf32>
    %101 = arith.divf %99, %100 : vector<16x1xf32>
    %102 = vector.broadcast %101 : vector<16x1xf32> to vector<16x32xf32>
    %103 = arith.subf %95, %102 : vector<16x32xf32>
    %104 = arith.mulf %103, %103 : vector<16x32xf32>
    %cst_41 = arith.constant dense<0.000000e+00> : vector<16xf32>
    %105 = vector.multi_reduction <add>, %104, %cst_41 [1] : vector<16x32xf32> to vector<16xf32>
    %106 = vector.shape_cast %105 : vector<16xf32> to vector<16x1xf32>
    %cst_42 = arith.constant 3.200000e+01 : f32
    %107 = vector.broadcast %cst_42 : f32 to vector<16x1xf32>
    %108 = arith.divf %106, %107 : vector<16x1xf32>
    %109 = vector.broadcast %101 : vector<16x1xf32> to vector<16x32xf32>
    %110 = arith.subf %95, %109 : vector<16x32xf32>
    %cst_43 = arith.constant 9.99999996E-13 : f32
    %111 = vector.broadcast %cst_43 : f32 to vector<16x1xf32>
    %112 = arith.addf %108, %111 : vector<16x1xf32>
    %113 = math.rsqrt %112 : vector<16x1xf32>
    %114 = vector.broadcast %113 : vector<16x1xf32> to vector<16x32xf32>
    %115 = arith.mulf %110, %114 : vector<16x32xf32>
    %116 = vector.broadcast %96 : vector<1x32xf32> to vector<16x32xf32>
    %117 = arith.mulf %115, %116 : vector<16x32xf32>
    %118 = vector.broadcast %97 : vector<1x32xf32> to vector<16x32xf32>
    %119 = arith.addf %117, %118 : vector<16x32xf32>
    %120 = vector.extract_strided_slice %33 {offsets = [0, 0], sizes = [32, 128], strides = [1, 1]} : vector<33x128xf32> to vector<32x128xf32>
    %cst_44 = arith.constant dense<0.000000e+00> : vector<16x128xf32>
    %121 = tpu.matmul %119, %120, %cst_44 {dimension_numbers = #tpu.dot_dimension_numbers<[1], [0], [0], [1], [0, 0, 1, 1], [], []>} : vector<16x32xf32>, vector<32x128xf32>, vector<16x128xf32> -> vector<16x128xf32>
    %122 = vector.extract_strided_slice %33 {offsets = [32, 0], sizes = [1, 128], strides = [1, 1]} : vector<33x128xf32> to vector<1x128xf32>
    %123 = vector.broadcast %122 : vector<1x128xf32> to vector<16x128xf32>
    %124 = arith.addf %121, %123 : vector<16x128xf32>
    %cst_45 = arith.constant 5.000000e-01 : f32
    %125 = vector.broadcast %cst_45 : f32 to vector<16x128xf32>
    %126 = arith.mulf %125, %124 : vector<16x128xf32>
    %cst_46 = arith.constant 4.471500e-02 : f32
    %127 = vector.broadcast %cst_46 : f32 to vector<16x128xf32>
    %128 = arith.mulf %127, %124 : vector<16x128xf32>
    %129 = arith.mulf %128, %124 : vector<16x128xf32>
    %130 = arith.mulf %129, %124 : vector<16x128xf32>
    %131 = arith.addf %124, %130 : vector<16x128xf32>
    %cst_47 = arith.constant 0.797884583 : f32
    %132 = vector.broadcast %cst_47 : f32 to vector<16x128xf32>
    %133 = arith.mulf %132, %131 : vector<16x128xf32>
    %134 = math.tanh %133 : vector<16x128xf32>
    %cst_48 = arith.constant 1.000000e+00 : f32
    %135 = vector.broadcast %cst_48 : f32 to vector<16x128xf32>
    %136 = arith.addf %135, %134 : vector<16x128xf32>
    %137 = arith.mulf %126, %136 : vector<16x128xf32>
    %138 = vector.extract_strided_slice %35 {offsets = [0, 0], sizes = [128, 32], strides = [1, 1]} : vector<129x32xf32> to vector<128x32xf32>
    %cst_49 = arith.constant dense<0.000000e+00> : vector<16x32xf32>
    %139 = tpu.matmul %137, %138, %cst_49 {dimension_numbers = #tpu.dot_dimension_numbers<[1], [0], [0], [1], [0, 0, 1, 1], [], []>} : vector<16x128xf32>, vector<128x32xf32>, vector<16x32xf32> -> vector<16x32xf32>
    %140 = vector.extract_strided_slice %35 {offsets = [128, 0], sizes = [1, 32], strides = [1, 1]} : vector<129x32xf32> to vector<1x32xf32>
    %141 = vector.broadcast %140 : vector<1x32xf32> to vector<16x32xf32>
    %142 = arith.addf %139, %141 : vector<16x32xf32>
    %143 = arith.addf %119, %142 : vector<16x32xf32>
    %144 = vector.extract_strided_slice %37 {offsets = [2, 0], sizes = [1, 32], strides = [1, 1]} : vector<4x32xf32> to vector<1x32xf32>
    %145 = vector.extract_strided_slice %37 {offsets = [3, 0], sizes = [1, 32], strides = [1, 1]} : vector<4x32xf32> to vector<1x32xf32>
    %cst_50 = arith.constant dense<0.000000e+00> : vector<16xf32>
    %146 = vector.multi_reduction <add>, %143, %cst_50 [1] : vector<16x32xf32> to vector<16xf32>
    %147 = vector.shape_cast %146 : vector<16xf32> to vector<16x1xf32>
    %cst_51 = arith.constant 3.200000e+01 : f32
    %148 = vector.broadcast %cst_51 : f32 to vector<16x1xf32>
    %149 = arith.divf %147, %148 : vector<16x1xf32>
    %150 = vector.broadcast %149 : vector<16x1xf32> to vector<16x32xf32>
    %151 = arith.subf %143, %150 : vector<16x32xf32>
    %152 = arith.mulf %151, %151 : vector<16x32xf32>
    %cst_52 = arith.constant dense<0.000000e+00> : vector<16xf32>
    %153 = vector.multi_reduction <add>, %152, %cst_52 [1] : vector<16x32xf32> to vector<16xf32>
    %154 = vector.shape_cast %153 : vector<16xf32> to vector<16x1xf32>
    %cst_53 = arith.constant 3.200000e+01 : f32
    %155 = vector.broadcast %cst_53 : f32 to vector<16x1xf32>
    %156 = arith.divf %154, %155 : vector<16x1xf32>
    %157 = vector.broadcast %149 : vector<16x1xf32> to vector<16x32xf32>
    %158 = arith.subf %143, %157 : vector<16x32xf32>
    %cst_54 = arith.constant 9.99999996E-13 : f32
    %159 = vector.broadcast %cst_54 : f32 to vector<16x1xf32>
    %160 = arith.addf %156, %159 : vector<16x1xf32>
    %161 = math.rsqrt %160 : vector<16x1xf32>
    %162 = vector.broadcast %161 : vector<16x1xf32> to vector<16x32xf32>
    %163 = arith.mulf %158, %162 : vector<16x32xf32>
    %164 = vector.broadcast %144 : vector<1x32xf32> to vector<16x32xf32>
    %165 = arith.mulf %163, %164 : vector<16x32xf32>
    %166 = vector.broadcast %145 : vector<1x32xf32> to vector<16x32xf32>
    %167 = arith.addf %165, %166 : vector<16x32xf32>
    %c1 = arith.constant 1 : index
    %c0_55 = arith.constant 0 : index
    %c0_56 = arith.constant 0 : index
    %168 = vector.load %arg3[%c1, %c0_55, %c0_56] : memref<2x33x128xf32, #tpu.memory_space<vmem>>, vector<1x33x128xf32>
    %169 = vector.shape_cast %168 : vector<1x33x128xf32> to vector<33x128xf32>
    %c1_57 = arith.constant 1 : index
    %c0_58 = arith.constant 0 : index
    %c0_59 = arith.constant 0 : index
    %170 = vector.load %arg4[%c1_57, %c0_58, %c0_59] : memref<2x33x32xf32, #tpu.memory_space<vmem>>, vector<1x33x32xf32>
    %171 = vector.shape_cast %170 : vector<1x33x32xf32> to vector<33x32xf32>
    %c1_60 = arith.constant 1 : index
    %c0_61 = arith.constant 0 : index
    %c0_62 = arith.constant 0 : index
    %172 = vector.load %arg5[%c1_60, %c0_61, %c0_62] : memref<2x33x128xf32, #tpu.memory_space<vmem>>, vector<1x33x128xf32>
    %173 = vector.shape_cast %172 : vector<1x33x128xf32> to vector<33x128xf32>
    %c1_63 = arith.constant 1 : index
    %c0_64 = arith.constant 0 : index
    %c0_65 = arith.constant 0 : index
    %174 = vector.load %arg6[%c1_63, %c0_64, %c0_65] : memref<2x129x32xf32, #tpu.memory_space<vmem>>, vector<1x129x32xf32>
    %175 = vector.shape_cast %174 : vector<1x129x32xf32> to vector<129x32xf32>
    %c1_66 = arith.constant 1 : index
    %c0_67 = arith.constant 0 : index
    %c0_68 = arith.constant 0 : index
    %176 = vector.load %arg7[%c1_66, %c0_67, %c0_68] : memref<2x4x32xf32, #tpu.memory_space<vmem>>, vector<1x4x32xf32>
    %177 = vector.shape_cast %176 : vector<1x4x32xf32> to vector<4x32xf32>
    %178 = vector.extract_strided_slice %169 {offsets = [0, 0], sizes = [32, 128], strides = [1, 1]} : vector<33x128xf32> to vector<32x128xf32>
    %cst_69 = arith.constant dense<0.000000e+00> : vector<16x128xf32>
    %179 = tpu.matmul %167, %178, %cst_69 {dimension_numbers = #tpu.dot_dimension_numbers<[1], [0], [0], [1], [0, 0, 1, 1], [], []>} : vector<16x32xf32>, vector<32x128xf32>, vector<16x128xf32> -> vector<16x128xf32>
    %180 = vector.extract_strided_slice %169 {offsets = [32, 0], sizes = [1, 128], strides = [1, 1]} : vector<33x128xf32> to vector<1x128xf32>
    %181 = vector.broadcast %180 : vector<1x128xf32> to vector<16x128xf32>
    %182 = arith.addf %179, %181 : vector<16x128xf32>
    %183 = vector.extract_strided_slice %171 {offsets = [32, 0], sizes = [1, 32], strides = [1, 1]} : vector<33x32xf32> to vector<1x32xf32>
    %184 = vector.extract_strided_slice %182 {offsets = [0, 0], sizes = [16, 16], strides = [1, 1]} : vector<16x128xf32> to vector<16x16xf32>
    %185 = vector.shape_cast %184 : vector<16x16xf32> to vector<2x8x16xf32>
    %186 = vector.extract_strided_slice %182 {offsets = [0, 32], sizes = [16, 16], strides = [1, 1]} : vector<16x128xf32> to vector<16x16xf32>
    %187 = vector.shape_cast %186 : vector<16x16xf32> to vector<2x8x16xf32>
    %188 = vector.extract_strided_slice %182 {offsets = [0, 64], sizes = [16, 16], strides = [1, 1]} : vector<16x128xf32> to vector<16x16xf32>
    %189 = vector.shape_cast %188 : vector<16x16xf32> to vector<2x8x16xf32>
    "tpu.trace_start"() <{level = 10 : i32, message = "bqd,bkd->bqk"}> : () -> ()
    %cst_70 = arith.constant dense<0.000000e+00> : vector<2x8x8xf32>
    %190 = tpu.matmul %185, %187, %cst_70 {dimension_numbers = #tpu.dot_dimension_numbers<[2], [2], [1], [1], [0, 0, 0, 1, 1, 1], [0], [0]>} : vector<2x8x16xf32>, vector<2x8x16xf32>, vector<2x8x8xf32> -> vector<2x8x8xf32>
    "tpu.trace_stop"() : () -> ()
    %cst_71 = arith.constant 2.500000e-01 : f32
    %191 = vector.broadcast %cst_71 : f32 to vector<2x8x8xf32>
    %192 = arith.mulf %190, %191 : vector<2x8x8xf32>
    %193 = arith.addf %192, %27 : vector<2x8x8xf32>
    %cst_72 = arith.constant dense<0xFF800000> : vector<2x8xf32>
    %194 = vector.multi_reduction <maximumf>, %193, %cst_72 [2] : vector<2x8x8xf32> to vector<2x8xf32>
    %195 = vector.shape_cast %194 : vector<2x8xf32> to vector<2x8x1xf32>
    %196 = vector.broadcast %195 : vector<2x8x1xf32> to vector<2x8x8xf32>
    %197 = arith.subf %193, %196 : vector<2x8x8xf32>
    %198 = math.exp %197 : vector<2x8x8xf32>
    %cst_73 = arith.constant dense<0.000000e+00> : vector<2x8xf32>
    %199 = vector.multi_reduction <add>, %198, %cst_73 [2] : vector<2x8x8xf32> to vector<2x8xf32>
    %200 = vector.shape_cast %199 : vector<2x8xf32> to vector<2x8x1xf32>
    %201 = tpu.reciprocal %200 {approx = true} : vector<2x8x1xf32> -> vector<2x8x1xf32>
    %202 = vector.broadcast %201 : vector<2x8x1xf32> to vector<2x8x8xf32>
    %203 = arith.mulf %198, %202 : vector<2x8x8xf32>
    "tpu.trace_start"() <{level = 10 : i32, message = "bqk,bkd->bqd"}> : () -> ()
    %cst_74 = arith.constant dense<0.000000e+00> : vector<2x8x16xf32>
    %204 = tpu.matmul %203, %189, %cst_74 {dimension_numbers = #tpu.dot_dimension_numbers<[2], [1], [1], [2], [0, 0, 0, 1, 1, 2], [0], [0]>} : vector<2x8x8xf32>, vector<2x8x16xf32>, vector<2x8x16xf32> -> vector<2x8x16xf32>
    "tpu.trace_stop"() : () -> ()
    %205 = vector.shape_cast %204 : vector<2x8x16xf32> to vector<16x16xf32>
    %206 = vector.extract_strided_slice %171 {offsets = [0, 0], sizes = [16, 32], strides = [1, 1]} : vector<33x32xf32> to vector<16x32xf32>
    %cst_75 = arith.constant dense<0.000000e+00> : vector<16x32xf32>
    %207 = tpu.matmul %205, %206, %cst_75 {dimension_numbers = #tpu.dot_dimension_numbers<[1], [0], [0], [1], [0, 0, 1, 1], [], []>} : vector<16x16xf32>, vector<16x32xf32>, vector<16x32xf32> -> vector<16x32xf32>
    %208 = vector.broadcast %183 : vector<1x32xf32> to vector<16x32xf32>
    %209 = arith.addf %208, %207 : vector<16x32xf32>
    %210 = vector.extract_strided_slice %182 {offsets = [0, 16], sizes = [16, 16], strides = [1, 1]} : vector<16x128xf32> to vector<16x16xf32>
    %211 = vector.shape_cast %210 : vector<16x16xf32> to vector<2x8x16xf32>
    %212 = vector.extract_strided_slice %182 {offsets = [0, 48], sizes = [16, 16], strides = [1, 1]} : vector<16x128xf32> to vector<16x16xf32>
    %213 = vector.shape_cast %212 : vector<16x16xf32> to vector<2x8x16xf32>
    %214 = vector.extract_strided_slice %182 {offsets = [0, 80], sizes = [16, 16], strides = [1, 1]} : vector<16x128xf32> to vector<16x16xf32>
    %215 = vector.shape_cast %214 : vector<16x16xf32> to vector<2x8x16xf32>
    "tpu.trace_start"() <{level = 10 : i32, message = "bqd,bkd->bqk"}> : () -> ()
    %cst_76 = arith.constant dense<0.000000e+00> : vector<2x8x8xf32>
    %216 = tpu.matmul %211, %213, %cst_76 {dimension_numbers = #tpu.dot_dimension_numbers<[2], [2], [1], [1], [0, 0, 0, 1, 1, 1], [0], [0]>} : vector<2x8x16xf32>, vector<2x8x16xf32>, vector<2x8x8xf32> -> vector<2x8x8xf32>
    "tpu.trace_stop"() : () -> ()
    %cst_77 = arith.constant 2.500000e-01 : f32
    %217 = vector.broadcast %cst_77 : f32 to vector<2x8x8xf32>
    %218 = arith.mulf %216, %217 : vector<2x8x8xf32>
    %219 = arith.addf %218, %27 : vector<2x8x8xf32>
    %cst_78 = arith.constant dense<0xFF800000> : vector<2x8xf32>
    %220 = vector.multi_reduction <maximumf>, %219, %cst_78 [2] : vector<2x8x8xf32> to vector<2x8xf32>
    %221 = vector.shape_cast %220 : vector<2x8xf32> to vector<2x8x1xf32>
    %222 = vector.broadcast %221 : vector<2x8x1xf32> to vector<2x8x8xf32>
    %223 = arith.subf %219, %222 : vector<2x8x8xf32>
    %224 = math.exp %223 : vector<2x8x8xf32>
    %cst_79 = arith.constant dense<0.000000e+00> : vector<2x8xf32>
    %225 = vector.multi_reduction <add>, %224, %cst_79 [2] : vector<2x8x8xf32> to vector<2x8xf32>
    %226 = vector.shape_cast %225 : vector<2x8xf32> to vector<2x8x1xf32>
    %227 = tpu.reciprocal %226 {approx = true} : vector<2x8x1xf32> -> vector<2x8x1xf32>
    %228 = vector.broadcast %227 : vector<2x8x1xf32> to vector<2x8x8xf32>
    %229 = arith.mulf %224, %228 : vector<2x8x8xf32>
    "tpu.trace_start"() <{level = 10 : i32, message = "bqk,bkd->bqd"}> : () -> ()
    %cst_80 = arith.constant dense<0.000000e+00> : vector<2x8x16xf32>
    %230 = tpu.matmul %229, %215, %cst_80 {dimension_numbers = #tpu.dot_dimension_numbers<[2], [1], [1], [2], [0, 0, 0, 1, 1, 2], [0], [0]>} : vector<2x8x8xf32>, vector<2x8x16xf32>, vector<2x8x16xf32> -> vector<2x8x16xf32>
    "tpu.trace_stop"() : () -> ()
    %231 = vector.shape_cast %230 : vector<2x8x16xf32> to vector<16x16xf32>
    %232 = vector.extract_strided_slice %171 {offsets = [16, 0], sizes = [16, 32], strides = [1, 1]} : vector<33x32xf32> to vector<16x32xf32>
    %cst_81 = arith.constant dense<0.000000e+00> : vector<16x32xf32>
    %233 = tpu.matmul %231, %232, %cst_81 {dimension_numbers = #tpu.dot_dimension_numbers<[1], [0], [0], [1], [0, 0, 1, 1], [], []>} : vector<16x16xf32>, vector<16x32xf32>, vector<16x32xf32> -> vector<16x32xf32>
    %234 = arith.addf %209, %233 : vector<16x32xf32>
    %235 = arith.addf %167, %234 : vector<16x32xf32>
    %236 = vector.extract_strided_slice %177 {offsets = [0, 0], sizes = [1, 32], strides = [1, 1]} : vector<4x32xf32> to vector<1x32xf32>
    %237 = vector.extract_strided_slice %177 {offsets = [1, 0], sizes = [1, 32], strides = [1, 1]} : vector<4x32xf32> to vector<1x32xf32>
    %cst_82 = arith.constant dense<0.000000e+00> : vector<16xf32>
    %238 = vector.multi_reduction <add>, %235, %cst_82 [1] : vector<16x32xf32> to vector<16xf32>
    %239 = vector.shape_cast %238 : vector<16xf32> to vector<16x1xf32>
    %cst_83 = arith.constant 3.200000e+01 : f32
    %240 = vector.broadcast %cst_83 : f32 to vector<16x1xf32>
    %241 = arith.divf %239, %240 : vector<16x1xf32>
    %242 = vector.broadcast %241 : vector<16x1xf32> to vector<16x32xf32>
    %243 = arith.subf %235, %242 : vector<16x32xf32>
    %244 = arith.mulf %243, %243 : vector<16x32xf32>
    %cst_84 = arith.constant dense<0.000000e+00> : vector<16xf32>
    %245 = vector.multi_reduction <add>, %244, %cst_84 [1] : vector<16x32xf32> to vector<16xf32>
    %246 = vector.shape_cast %245 : vector<16xf32> to vector<16x1xf32>
    %cst_85 = arith.constant 3.200000e+01 : f32
    %247 = vector.broadcast %cst_85 : f32 to vector<16x1xf32>
    %248 = arith.divf %246, %247 : vector<16x1xf32>
    %249 = vector.broadcast %241 : vector<16x1xf32> to vector<16x32xf32>
    %250 = arith.subf %235, %249 : vector<16x32xf32>
    %cst_86 = arith.constant 9.99999996E-13 : f32
    %251 = vector.broadcast %cst_86 : f32 to vector<16x1xf32>
    %252 = arith.addf %248, %251 : vector<16x1xf32>
    %253 = math.rsqrt %252 : vector<16x1xf32>
    %254 = vector.broadcast %253 : vector<16x1xf32> to vector<16x32xf32>
    %255 = arith.mulf %250, %254 : vector<16x32xf32>
    %256 = vector.broadcast %236 : vector<1x32xf32> to vector<16x32xf32>
    %257 = arith.mulf %255, %256 : vector<16x32xf32>
    %258 = vector.broadcast %237 : vector<1x32xf32> to vector<16x32xf32>
    %259 = arith.addf %257, %258 : vector<16x32xf32>
    %260 = vector.extract_strided_slice %173 {offsets = [0, 0], sizes = [32, 128], strides = [1, 1]} : vector<33x128xf32> to vector<32x128xf32>
    %cst_87 = arith.constant dense<0.000000e+00> : vector<16x128xf32>
    %261 = tpu.matmul %259, %260, %cst_87 {dimension_numbers = #tpu.dot_dimension_numbers<[1], [0], [0], [1], [0, 0, 1, 1], [], []>} : vector<16x32xf32>, vector<32x128xf32>, vector<16x128xf32> -> vector<16x128xf32>
    %262 = vector.extract_strided_slice %173 {offsets = [32, 0], sizes = [1, 128], strides = [1, 1]} : vector<33x128xf32> to vector<1x128xf32>
    %263 = vector.broadcast %262 : vector<1x128xf32> to vector<16x128xf32>
    %264 = arith.addf %261, %263 : vector<16x128xf32>
    %cst_88 = arith.constant 5.000000e-01 : f32
    %265 = vector.broadcast %cst_88 : f32 to vector<16x128xf32>
    %266 = arith.mulf %265, %264 : vector<16x128xf32>
    %cst_89 = arith.constant 4.471500e-02 : f32
    %267 = vector.broadcast %cst_89 : f32 to vector<16x128xf32>
    %268 = arith.mulf %267, %264 : vector<16x128xf32>
    %269 = arith.mulf %268, %264 : vector<16x128xf32>
    %270 = arith.mulf %269, %264 : vector<16x128xf32>
    %271 = arith.addf %264, %270 : vector<16x128xf32>
    %cst_90 = arith.constant 0.797884583 : f32
    %272 = vector.broadcast %cst_90 : f32 to vector<16x128xf32>
    %273 = arith.mulf %272, %271 : vector<16x128xf32>
    %274 = math.tanh %273 : vector<16x128xf32>
    %cst_91 = arith.constant 1.000000e+00 : f32
    %275 = vector.broadcast %cst_91 : f32 to vector<16x128xf32>
    %276 = arith.addf %275, %274 : vector<16x128xf32>
    %277 = arith.mulf %266, %276 : vector<16x128xf32>
    %278 = vector.extract_strided_slice %175 {offsets = [0, 0], sizes = [128, 32], strides = [1, 1]} : vector<129x32xf32> to vector<128x32xf32>
    %cst_92 = arith.constant dense<0.000000e+00> : vector<16x32xf32>
    %279 = tpu.matmul %277, %278, %cst_92 {dimension_numbers = #tpu.dot_dimension_numbers<[1], [0], [0], [1], [0, 0, 1, 1], [], []>} : vector<16x128xf32>, vector<128x32xf32>, vector<16x32xf32> -> vector<16x32xf32>
    %280 = vector.extract_strided_slice %175 {offsets = [128, 0], sizes = [1, 32], strides = [1, 1]} : vector<129x32xf32> to vector<1x32xf32>
    %281 = vector.broadcast %280 : vector<1x32xf32> to vector<16x32xf32>
    %282 = arith.addf %279, %281 : vector<16x32xf32>
    %283 = arith.addf %259, %282 : vector<16x32xf32>
    %284 = vector.extract_strided_slice %177 {offsets = [2, 0], sizes = [1, 32], strides = [1, 1]} : vector<4x32xf32> to vector<1x32xf32>
    %285 = vector.extract_strided_slice %177 {offsets = [3, 0], sizes = [1, 32], strides = [1, 1]} : vector<4x32xf32> to vector<1x32xf32>
    %cst_93 = arith.constant dense<0.000000e+00> : vector<16xf32>
    %286 = vector.multi_reduction <add>, %283, %cst_93 [1] : vector<16x32xf32> to vector<16xf32>
    %287 = vector.shape_cast %286 : vector<16xf32> to vector<16x1xf32>
    %cst_94 = arith.constant 3.200000e+01 : f32
    %288 = vector.broadcast %cst_94 : f32 to vector<16x1xf32>
    %289 = arith.divf %287, %288 : vector<16x1xf32>
    %290 = vector.broadcast %289 : vector<16x1xf32> to vector<16x32xf32>
    %291 = arith.subf %283, %290 : vector<16x32xf32>
    %292 = arith.mulf %291, %291 : vector<16x32xf32>
    %cst_95 = arith.constant dense<0.000000e+00> : vector<16xf32>
    %293 = vector.multi_reduction <add>, %292, %cst_95 [1] : vector<16x32xf32> to vector<16xf32>
    %294 = vector.shape_cast %293 : vector<16xf32> to vector<16x1xf32>
    %cst_96 = arith.constant 3.200000e+01 : f32
    %295 = vector.broadcast %cst_96 : f32 to vector<16x1xf32>
    %296 = arith.divf %294, %295 : vector<16x1xf32>
    %297 = vector.broadcast %289 : vector<16x1xf32> to vector<16x32xf32>
    %298 = arith.subf %283, %297 : vector<16x32xf32>
    %cst_97 = arith.constant 9.99999996E-13 : f32
    %299 = vector.broadcast %cst_97 : f32 to vector<16x1xf32>
    %300 = arith.addf %296, %299 : vector<16x1xf32>
    %301 = math.rsqrt %300 : vector<16x1xf32>
    %302 = vector.broadcast %301 : vector<16x1xf32> to vector<16x32xf32>
    %303 = arith.mulf %298, %302 : vector<16x32xf32>
    %304 = vector.broadcast %284 : vector<1x32xf32> to vector<16x32xf32>
    %305 = arith.mulf %303, %304 : vector<16x32xf32>
    %306 = vector.broadcast %285 : vector<1x32xf32> to vector<16x32xf32>
    %307 = arith.addf %305, %306 : vector<16x32xf32>
    %308 = vector.shape_cast %307 : vector<16x32xf32> to vector<2x8x32xf32>
    %309 = vector.extract_strided_slice %308 {offsets = [0, 0, 0], sizes = [2, 1, 32], strides = [1, 1, 1]} : vector<2x8x32xf32> to vector<2x1x32xf32>
    %310 = vector.shape_cast %309 : vector<2x1x32xf32> to vector<2x32xf32>
    %c0_98 = arith.constant 0 : index
    %c0_99 = arith.constant 0 : index
    %311 = vector.load %arg8[%c0_98, %c0_99] : memref<33x128xf32, #tpu.memory_space<vmem>>, vector<33x128xf32>
    %312 = vector.extract_strided_slice %311 {offsets = [0, 0], sizes = [32, 128], strides = [1, 1]} : vector<33x128xf32> to vector<32x128xf32>
    %cst_100 = arith.constant dense<0.000000e+00> : vector<2x128xf32>
    %313 = tpu.matmul %310, %312, %cst_100 {dimension_numbers = #tpu.dot_dimension_numbers<[1], [0], [0], [1], [0, 0, 1, 1], [], []>} : vector<2x32xf32>, vector<32x128xf32>, vector<2x128xf32> -> vector<2x128xf32>
    %314 = vector.extract_strided_slice %311 {offsets = [32, 0], sizes = [1, 128], strides = [1, 1]} : vector<33x128xf32> to vector<1x128xf32>
    %315 = vector.broadcast %314 : vector<1x128xf32> to vector<2x128xf32>
    %316 = arith.addf %313, %315 : vector<2x128xf32>
    %317 = math.tanh %316 : vector<2x128xf32>
    %c0_101 = arith.constant 0 : index
    %c0_102 = arith.constant 0 : index
    %318 = vector.load %arg9[%c0_101, %c0_102] : memref<129x128xf32, #tpu.memory_space<vmem>>, vector<129x128xf32>
    %319 = vector.extract_strided_slice %318 {offsets = [0, 0], sizes = [128, 128], strides = [1, 1]} : vector<129x128xf32> to vector<128x128xf32>
    %cst_103 = arith.constant dense<0.000000e+00> : vector<2x128xf32>
    %320 = tpu.matmul %317, %319, %cst_103 {dimension_numbers = #tpu.dot_dimension_numbers<[1], [0], [0], [1], [0, 0, 1, 1], [], []>} : vector<2x128xf32>, vector<128x128xf32>, vector<2x128xf32> -> vector<2x128xf32>
    %321 = vector.extract_strided_slice %318 {offsets = [128, 0], sizes = [1, 128], strides = [1, 1]} : vector<129x128xf32> to vector<1x128xf32>
    %322 = vector.broadcast %321 : vector<1x128xf32> to vector<2x128xf32>
    %323 = arith.addf %320, %322 : vector<2x128xf32>
    %c0_104 = arith.constant 0 : index
    %c0_105 = arith.constant 0 : index
    %324 = vector.load %arg10[%c0_104, %c0_105] : memref<2x128xf32, #tpu.memory_space<vmem>>, vector<2x128xf32>
    tpu.vector_store %arg10[%c0_104, %c0_105], %323 {strides = array<i32>} : memref<2x128xf32, #tpu.memory_space<vmem>>, vector<2x128xf32>,
    return
  }
}

</mosaic_0001>

<bundles_post_ra>
// kernel: tpu_custom_call.1
= control target key start
LH: loop header
LB: loop body
LE: loop exit
PB: predicated region body
PF: predicated region fallthrough
CT: control target
= control target key end

     0   :  { %vm39_vm0 = vcmask 261120   ;;  %s4066_s0 = inlined_call_operand.vmem [shape: f32[2,8,32], index: 0, kind: input, shape index: {}]   ;;  %s4067_s1 = inlined_call_operand.vmem [shape: f32[2,8,8], index: 1, kind: input, shape index: {}]   ;;  %s4068_s2 = inlined_call_operand.vmem [shape: f32[2,32], index: 2, kind: input, shape index: {}]   ;;  %s4069_s3 = inlined_call_operand.vmem [shape: f32[2,33,128], index: 3, kind: input, shape index: {}]   ;;  %s4070_s4 = inlined_call_operand.vmem [shape: f32[2,33,32], index: 4, kind: input, shape index: {}]   ;;  %s4071_s5 = inlined_call_operand.vmem [shape: f32[2,33,128], index: 5, kind: input, shape index: {}]   ;;  %s4072_s6 = inlined_call_operand.vmem [shape: f32[2,129,32], index: 6, kind: input, shape index: {}]   ;;  %s4073_s7 = inlined_call_operand.vmem [shape: f32[2,4,32], index: 7, kind: input, shape index: {}]   ;;  %s4074_s8 = inlined_call_operand.vmem [shape: f32[33,128], index: 8, kind: input, shape index: {}]   ;;  %s4075_s9 = inlined_call_operand.vmem [shape: f32[129,128], index: 9, kind: input, shape index: {}]   ;;  %s4076_s10 = inlined_call_operand.hbm [shape: f32[2,128], index: 10, kind: output, shape index: {}]  }
   0x1   :  { %v36_v0 = vld [vmem:[%s4066_s0] sm:$0xff]  ;;  %v37_v1 = vld [vmem:[%s4066_s0 + $0x8] sm:$0xff] }
   0x2   :  { %15 = vsyncpa [#allocation3], 0  ;;  %v40_v2 = vsel %vm39_vm0, %v36_v0, 0.0  ;;  %v43_v3 = vsel %vm39_vm0, %v37_v1, 0.0  ;;  %v81_v14 = vld [vmem:[%s4069_s3] sm:$0xff]  ;;  %v82_v15 = vld [vmem:[%s4069_s3 + $0x8] sm:$0xff]  ;;  %v67_v22 = vlaneseq }
   0x3   :  { %41 = vadd.xlane.f32.xlu0 %v40_v2  ;;  %v83_v16 = vld [vmem:[%s4069_s3 + $0x10] sm:$0xff]  ;;  %v3195_v17 = vpack.c.bf16 %v82_v15, %v81_v14  ;;  %v84_v18 = vld [vmem:[%s4069_s3 + $0x18] sm:$0xff]  ;;  %v38_v29 = vld [vmem:[%s4068_s2] sm:$0x3]  ;;  %v3440_v41 = vmov 0.0   ;;  %vm3441_vm1 = vmmov 0  }
   0x4   :  { %v3199_v19 = vpack.c.bf16 %v84_v18, %v83_v16  ;;  %v3526_v26 = vshrl.u32 %v67_v22, 7  ;;  %2948 = vmatprep.subr.mxu0 %v3440_v41  ;;  %2950 = vmatprep.mubr.msk.f32.mxu0 %vm3441_vm1, %v3440_v41  ;;  %v2713_v42 = vld [vmem:[%s4069_s3 + $0x20] ss:$0 sm:$0xff]  ;;  %s3442_s27 = smov 96   ;;  %vm202_vm2 = vcmask 130048   ;;  %vm358_vm3 = vcmask 64512  }
   0x5   :  { %3196 = vmatprep.subr.bf16.mxu1 %v3195_v17  ;;  %v3579_v50 = vld [vmem:[%s4067_s1] sm:$0xff]  ;;  %v3585_v55 = vld [vmem:[%s4067_s1 + $0x8] sm:$0xff]  ;;  %s3443_s1 = smov 64   ;;  %s3444_s12 = smov 80   ;;  %vm2532_vm4 = vcmask 1041409  }
   0x6   :  { %3198 = vmatpush3.bf16.msra.mxu1 %v3195_v17  ;;  %v3529_v28 = vsub.s32 0, %v3526_v26  ;;  %v3535_v30 = vsub.s32 1, %v3526_v26  ;;  %s3445_s13 = smov 112   ;;  %s3446_s17 = smov 48  }
   0x7   :  { %44 = vadd.xlane.f32.xlu0 %v43_v3  ;;  %3200 = vmatprep.subr.bf16.mxu1 %v3199_v19  ;;  %s3448_s19 = smov [#allocation2]  }
   0x8   :  { %v70_v31 = vrot.slane %v38_v29, %v3529_v28  ;;  %v76_v34 = vrot.slane %v38_v29, %v3535_v30  ;;  %s2705_s20 = sshll.u32 %s3448_s19, 4  ;;  %s2706_s20 = int_to_ptr.vmem [resolvable:$true] %s2705_s20 }
   0x9   :  { %s3416_s21 = scalar_lea.vmem %s2706_s20, 32  ;;  %p3421_p1 = scmp.lt.s32.totalorder %s2706_s20, %s2706_s20 }
   0xa   :  { %3202 = vmatpush3.bf16.msra.mxu1 %v3199_v19  ;;  %p3417_p0 = scmp.ne.s32.totalorder %s2706_s20, %s3416_s21  ;;  %p3422_p2 = scmp.lt.s32.totalorder %s3416_s21, %s3416_s21 }
   0xb   :  { %2938 = vmatprep.subr.mxu1 %v3440_v41 }
   0xc   :  { %p3423_p3 = por %p3422_p2, %p3421_p1 }
   0xe   :  { %p3424_p4 = pnand %p3423_p3, %p3417_p0 }
  0x90   :  { %v42_v4 = vpop.xlane.xlu0 %41 }
  0x91   :  { %v47_v5 = vmul.f32 0.03125, %v42_v4 }
  0x93   :  { %v49_v6 = vsub.f32 %v36_v0, %v47_v5 }
  0x94   :  { %v45_v7 = vpop.xlane.xlu0 %44 }
  0x95   :  { %v48_v8 = vmul.f32 0.03125, %v45_v7  ;;  %v51_v9 = vmul.f32 %v49_v6, %v49_v6  ;;  %v86_v7 = vld [vmem:[%s4070_s4] sm:$0xff] }
  0x97   :  { %v50_v10 = vsub.f32 %v37_v1, %v48_v8  ;;  %v53_v11 = vsel %vm39_vm0, %v51_v9, 0.0  ;;  %v87_v8 = vld [vmem:[%s4070_s4 + $0x8] sm:$0xff] }
  0x98   :  { %54 = vadd.xlane.f32.xlu1 %v53_v11 }
  0x99   :  { %v52_v12 = vmul.f32 %v50_v10, %v50_v10 }
  0x9b   :  { %v56_v13 = vsel %vm39_vm0, %v52_v12, 0.0 }
  0x9c   :  { %57 = vadd.xlane.f32.xlu1 %v56_v13 }
 0x125   :  { %v55_v20 = vpop.xlane.xlu1 %54 }
 0x126   :  { %v59_v21 = vmul.f32 0.03125, %v55_v20 }
 0x128   :  { %v61_v23 = vadd.f32 1e-12, %v59_v21 }
 0x129   :  { %v58_v24 = vpop.xlane.xlu1 %57 }
 0x12a   :  { %3354 = vrsqrt.f32 %v61_v23  ;;  %v60_v25 = vmul.f32 0.03125, %v58_v24 }
 0x12c   :  { %v62_v27 = vadd.f32 1e-12, %v60_v25 }
 0x12e   :  { %3356 = vrsqrt.f32 %v62_v27 }
 0x134   :  { %v3355_v32 = vpop.eup %3354 }
 0x135   :  { %v65_v33 = vmul.f32 %v3355_v32, %v49_v6 }
 0x137   :  { %v71_v35 = vmul.f32 %v70_v31, %v65_v33 }
 0x138   :  { %v3357_v36 = vpop.eup %3356 }
 0x139   :  { %v66_v37 = vmul.f32 %v3357_v36, %v50_v10  ;;  %v3539_v38 = vadd.f32 %v76_v34, %v71_v35  ;;  %v3203_v10 = vpack.c.bf16 %v87_v8, %v86_v7 }
 0x13b   :  { %v72_v39 = vmul.f32 %v70_v31, %v66_v37  ;;  %2935 = vmatprep.mubr.msk.f32.mxu1 %vm39_vm0, %v3539_v38 }
 0x13d   :  { %v3543_v40 = vadd.f32 %v76_v34, %v72_v39 }
 0x13f   :  { %2936 = vmatmul.mubr.msk.f32.vlgmr.msra.gmra.mrb[0].mxu1 %vm39_vm0, %v3543_v40 }
 0x140   :  { %2940 = vmatprep.mubr.msk.f32.mxu1 %vm3441_vm1, %v3440_v41 }
 0x212   :  { %v2937_v43 = vpop.f32.mrb[0].mxu1 }
 0x213   :  { %v3556_v44 = vadd.f32 %v2937_v43, %v2713_v42  ;;  %v190_v45 = vpop.f32.mrb[1].mxu1 }
 0x214   :  { %v3558_v46 = vadd.f32 %v2713_v42, %v190_v45 }
 0x215   :  { %278 = vrot.lane.b32.xlu1 %v3556_v44, %s3442_s27 }
 0x216   :  { %200 = vrot.lane.b32.xlu0 %v3558_v46, %s3442_s27 }
 0x287   :  { %v279_v48 = vpop.permute.xlu1 %278 }
 0x288   :  { %v201_v47 = vpop.permute.xlu0 %200 }
 0x289   :  { %2939 = vmatpush3.xpose.msk.msra.mxu1 %vm202_vm2, %v201_v47 }
 0x28a   :  { %2943 = vmatprep.subr.mxu1 %v3440_v41 }
 0x28c   :  { %2941 = vmatmul.mubr.msk.f32.vlgmr.msra.gmra.mrb[2].mxu1 %vm202_vm2, %v3558_v46 }
 0x28d   :  { %2944 = vmatpush3.xpose.msk.msra.mxu1 %vm202_vm2, %v279_v48  ;;  %2945 = vmatprep.mubr.msk.f32.mxu1 %vm3441_vm1, %v3440_v41 }
 0x28e   :  { %2953 = vmatprep.subr.mxu1 %v3440_v41 }
 0x290   :  { %2946 = vmatmul.mubr.msk.f32.vlgmr.msra.gmra.mrb[4].mxu1 %vm202_vm2, %v3556_v44 }
 0x291   :  { %2955 = vmatprep.mubr.msk.f32.mxu1 %vm3441_vm1, %v3440_v41 }
 0x35f   :  { %v273_v49 = vpop.f32.mrb[2].mxu1 }
 0x360   :  { %v354_v51 = vmul.f32 0.25, %v273_v49  ;;  %v2942_v52 = vpop.f32.mrb[3].mxu1 }
 0x362   :  { %v356_v53 = vadd.f32 %v354_v51, %v3579_v50 }
 0x363   :  { %v350_v54 = vpop.f32.mrb[4].mxu1 }
 0x364   :  { %v355_v56 = vmul.f32 0.25, %v350_v54  ;;  %v2947_v57 = vpop.f32.mrb[5].mxu1  ;;  %v359_v58 = vsel %vm358_vm3, %v356_v53, -inf }
 0x365   :  { %360 = vmax.xlane.f32.xlu1 %v359_v58 }
 0x366   :  { %v357_v59 = vadd.f32 %v355_v56, %v3585_v55 }
 0x368   :  { %v362_v60 = vsel %vm358_vm3, %v357_v59, -inf }
 0x369   :  { %363 = vmax.xlane.f32.xlu0 %v362_v60 }
 0x3f2   :  { %v361_v61 = vpop.xlane.xlu1 %360 }
 0x3f3   :  { %v365_v62 = vsub.f32 %v356_v53, %v361_v61 }
 0x3f5   :  { %v367_v63 = vmul.f32 1.442695, %v365_v62 }
 0x3f6   :  { %v364_v0 = vpop.xlane.xlu0 %363 }
 0x3f7   :  { %3358 = vpow2.f32 %v367_v63  ;;  %v366_v1 = vsub.f32 %v357_v59, %v364_v0  ;;  %v88_v63 = vld [vmem:[%s4070_s4 + $0x10] sm:$0xff] }
 0x3f9   :  { %v369_v2 = vmul.f32 1.442695, %v366_v1 }
 0x3fb   :  { %3360 = vpow2.f32 %v369_v2 }
 0x401   :  { %v3359_v3 = vpop.eup %3358 }
 0x402   :  { %v371_v4 = vsel %vm358_vm3, %v3359_v3, 0.0 }
 0x403   :  { %372 = vadd.xlane.f32.xlu0 %v371_v4 }
 0x405   :  { %v3361_v5 = vpop.eup %3360 }
 0x406   :  { %v374_v6 = vsel %vm358_vm3, %v3361_v5, 0.0 }
 0x407   :  { %375 = vadd.xlane.f32.xlu1 %v374_v6 }
 0x418   :  { %457 = vrot.lane.b32.xlu1 %v3556_v44, %s3443_s1 }
 0x419   :  { %381 = vrot.lane.b32.xlu0 %v3558_v46, %s3443_s1 }
 0x41c   :  { %622 = vrot.lane.b32.xlu1 %v3558_v46, %s3444_s12 }
 0x41d   :  { %620 = vrot.lane.b32.xlu0 %v3558_v46, %s3445_s13 }
 0x420   :  { %700 = vrot.lane.b32.xlu1 %v3556_v44, %s3444_s12 }
 0x424   :  { %698 = vrot.lane.b32.xlu1 %v3556_v44, %s3445_s13 }
 0x490   :  { %v373_v9 = vpop.xlane.xlu0 %372 }
 0x491   :  { %3362 = vrcp.f32 %v373_v9 }
 0x494   :  { %v376_v11 = vpop.xlane.xlu1 %375  ;;  %v382_v12 = vpop.permute.xlu0 %381 }
 0x495   :  { %3364 = vrcp.f32 %v376_v11  ;;  %2949 = vmatpush3.msra.mxu0 %v382_v12 }
 0x496   :  { %3204 = vmatprep.subr.bf16.mxu0 %v3203_v10 }
 0x498   :  { %v458_v13 = vpop.permute.xlu1 %457  ;;  %v621_v19 = vpop.permute.xlu0 %620 }
 0x499   :  { %2954 = vmatpush3.msra.mxu1 %v458_v13 }
 0x49a   :  { %2965 = vmatprep.subr.mxu1 %v3440_v41 }
 0x49b   :  { %v3363_v14 = vpop.eup %3362 }
 0x49c   :  { %v379_v15 = vmul.f32 %v3363_v14, %v3359_v3  ;;  %v623_v18 = vpop.permute.xlu1 %622 }
 0x49e   :  { %2951 = vmatmul.mubr.msk.f32.vlgmr.msra.gmra.mrb[0].mxu0 %vm358_vm3, %v379_v15 }
 0x49f   :  { %v3365_v16 = vpop.eup %3364  ;;  %3206 = vmatpush3.bf16.msra.mxu0 %v3203_v10 }
 0x4a0   :  { %v380_v17 = vmul.f32 %v3365_v16, %v3361_v5  ;;  %2970 = vmatprep.subr.mxu0 %v3440_v41  ;;  %v701_v22 = vpop.permute.xlu1 %700  ;;  %v2724_v5 = vld [vmem:[%s4070_s4 + $0x20] ss:$0 sm:$0xff] }
 0x4a2   :  { %2956 = vmatmul.mubr.msk.f32.vlgmr.msra.gmra.mrb[6].mxu1 %vm358_vm3, %v380_v17 }
 0x4a3   :  { %2966 = vmatpush3.xpose.msk.msra.mxu1 %vm202_vm2, %v623_v18  ;;  %2967 = vmatprep.mubr.msk.f32.mxu1 %vm3441_vm1, %v3440_v41 }
 0x4a4   :  { %2975 = vmatprep.subr.mxu1 %v3440_v41  ;;  %v699_v25 = vpop.permute.xlu1 %698 }
 0x4a6   :  { %2968 = vmatmul.mubr.msk.f32.vlgmr.msra.gmra.mrb[8].mxu1 %vm202_vm2, %v621_v19 }
 0x4a7   :  { %2977 = vmatprep.mubr.msk.f32.mxu1 %vm3441_vm1, %v3440_v41 }
 0x571   :  { %v453_v20 = vpop.f32.mrb[0].mxu0 }
 0x572   :  { %v2952_v21 = vpop.f32.mrb[1].mxu0  ;;  %2962 = vmatprep.mubr.msk.f32.mxu0 %vm202_vm2, %v453_v20 }
 0x575   :  { %v529_v23 = vpop.f32.mrb[6].mxu1 }
 0x576   :  { %v2957_v24 = vpop.f32.mrb[7].mxu1  ;;  %2963 = vmatmul.mubr.msk.f32.vlgmr.msra.gmra.mrb[2].mxu0 %vm202_vm2, %v529_v23  ;;  %v92_v23 = vld [vmem:[%s4071_s5 + $0x8] sm:$0xff] }
 0x577   :  { %2971 = vmatpush3.xpose.msk.msra.mxu0 %vm202_vm2, %v701_v22  ;;  %2972 = vmatprep.mubr.msk.f32.mxu0 %vm3441_vm1, %v3440_v41 }
 0x578   :  { %2980 = vmatprep.subr.mxu0 %v3440_v41 }
 0x579   :  { %v694_v27 = vpop.f32.mrb[8].mxu1 }
 0x57a   :  { %v776_v29 = vmul.f32 0.25, %v694_v27  ;;  %v2969_v31 = vpop.f32.mrb[9].mxu1  ;;  %2973 = vmatmul.mubr.msk.f32.vlgmr.msra.gmra.mrb[4].mxu0 %vm202_vm2, %v699_v25  ;;  %v93_v25 = vld [vmem:[%s4071_s5 + $0x10] sm:$0xff]  ;;  %v94_v27 = vld [vmem:[%s4071_s5 + $0x18] sm:$0xff] }
 0x57b   :  { %2982 = vmatprep.mubr.msk.f32.mxu0 %vm3441_vm1, %v3440_v41  ;;  %v96_v31 = vld [vmem:[%s4072_s6] sm:$0xff] }
 0x57c   :  { %v778_v32 = vadd.f32 %v776_v29, %v3579_v50  ;;  %v3215_v29 = vpack.c.bf16 %v94_v27, %v93_v25 }
 0x57e   :  { %v780_v33 = vsel %vm358_vm3, %v778_v32, -inf }
 0x57f   :  { %781 = vmax.xlane.f32.xlu0 %v780_v33 }
 0x60c   :  { %v782_v34 = vpop.xlane.xlu0 %781 }
 0x60d   :  { %v786_v35 = vsub.f32 %v778_v32, %v782_v34  ;;  %v97_v32 = vld [vmem:[%s4072_s6 + $0x8] sm:$0xff] }
 0x60e   :  { %v3219_v33 = vpack.c.bf16 %v97_v32, %v96_v31 }
 0x60f   :  { %v788_v36 = vmul.f32 1.442695, %v786_v35 }
 0x611   :  { %3366 = vpow2.f32 %v788_v36 }
 0x61b   :  { %v3367_v37 = vpop.eup %3366 }
 0x61c   :  { %v792_v39 = vsel %vm358_vm3, %v3367_v37, 0.0 }
 0x61d   :  { %793 = vadd.xlane.f32.xlu0 %v792_v39 }
 0x64d   :  { %v772_v42 = vpop.f32.mrb[4].mxu0 }
 0x64e   :  { %v777_v43 = vmul.f32 0.25, %v772_v42  ;;  %v2974_v45 = vpop.f32.mrb[5].mxu0 }
 0x650   :  { %v779_v47 = vadd.f32 %v777_v43, %v3585_v55  ;;  %v3680_v43 = vld [vmem:[%s4073_s7] sm:$0xf] }
 0x651   :  { %v1068_v45 = vrot.slane %v3680_v43, %v3529_v28 }
 0x652   :  { %v783_v48 = vsel %vm358_vm3, %v779_v47, -inf }
 0x653   :  { %784 = vmax.xlane.f32.xlu1 %v783_v48 }
 0x664   :  { %878 = vrot.lane.b32.xlu1 %v3556_v44, %s3446_s17 }
 0x6aa   :  { %v794_v57 = vpop.xlane.xlu0 %793 }
 0x6e0   :  { %v785_v49 = vpop.xlane.xlu1 %784 }
 0x6e1   :  { %v787_v51 = vsub.f32 %v779_v47, %v785_v49 }
 0x6e3   :  { %v790_v52 = vmul.f32 1.442695, %v787_v51 }
 0x6e4   :  { %v879_v53 = vpop.permute.xlu1 %878 }
 0x6e5   :  { %3368 = vpow2.f32 %v790_v52  ;;  %2981 = vmatpush3.msra.mxu0 %v879_v53  ;;  %v1074_v52 = vrot.slane %v3680_v43, %v3535_v30 }
 0x6e6   :  { %3370 = vrcp.f32 %v794_v57 }
 0x6ef   :  { %v3369_v54 = vpop.eup %3368 }
 0x6f0   :  { %v795_v56 = vsel %vm358_vm3, %v3369_v54, 0.0  ;;  %v3371_v59 = vpop.eup %3370 }
 0x6f1   :  { %796 = vadd.xlane.f32.xlu0 %v795_v56  ;;  %v800_v60 = vmul.f32 %v3371_v59, %v3367_v37  ;;  %v99_v59 = vld [vmem:[%s4072_s6 + $0x18] sm:$0xff] }
 0x707   :  { %802 = vrot.lane.b32.xlu0 %v3558_v46, %s3446_s17  ;;  %v89_v46 = vld [vmem:[%s4070_s4 + $0x18] sm:$0xff] }
 0x708   :  { %v3207_v0 = vpack.c.bf16 %v89_v46, %v88_v63  ;;  %v102_v63 = vld [vmem:[%s4072_s6 + $0x30] sm:$0xff]  ;;  %v103_v46 = vld [vmem:[%s4072_s6 + $0x38] sm:$0xff] }
 0x70a   :  { %3208 = vmatprep.subr.bf16.mxu0 %v3207_v0 }
 0x77e   :  { %v797_v58 = vpop.xlane.xlu0 %796 }
 0x77f   :  { %3372 = vrcp.f32 %v797_v58  ;;  %v98_v58 = vld [vmem:[%s4072_s6 + $0x10] sm:$0xff] }
 0x782   :  { %v803_v44 = vpop.permute.xlu0 %802 }
 0x783   :  { %2976 = vmatpush3.msra.mxu1 %v803_v44  ;;  %v100_v44 = vld [vmem:[%s4072_s6 + $0x20] sm:$0xff] }
 0x784   :  { %2978 = vmatmul.mubr.msk.f32.vlgmr.msra.gmra.mrb[10].mxu1 %vm358_vm3, %v800_v60  ;;  %v3223_v60 = vpack.c.bf16 %v99_v59, %v98_v58 }
 0x789   :  { %v3373_v61 = vpop.eup %3372 }
 0x78a   :  { %v801_v62 = vmul.f32 %v3373_v61, %v3369_v54  ;;  %v101_v61 = vld [vmem:[%s4072_s6 + $0x28] sm:$0xff] }
 0x78c   :  { %2983 = vmatmul.mubr.msk.f32.vlgmr.msra.gmra.mrb[6].mxu0 %vm358_vm3, %v801_v62  ;;  %v3227_v62 = vpack.c.bf16 %v101_v61, %v100_v44 }
 0x78d   :  { %3210 = vmatpush3.bf16.msra.mxu0 %v3207_v0  ;;  %v3231_v0 = vpack.c.bf16 %v103_v46, %v102_v63  ;;  %v2738_v46 = vld [vmem:[%s4069_s3 + $0x30] sm:$0xff] }
 0x78e   :  { %3220 = vmatprep.subr.bf16.mxu0 %v3219_v33 }
 0x857   :  { %v874_v1 = vpop.f32.mrb[10].mxu1 }
 0x858   :  { %v2979_v2 = vpop.f32.mrb[11].mxu1  ;;  %2989 = vmatprep.mubr.msk.f32.mxu0 %vm202_vm2, %v874_v1  ;;  %v104_v1 = vld [vmem:[%s4072_s6 + $0x40] sm:$0xff] }
 0x859   :  { %v105_v2 = vld [vmem:[%s4072_s6 + $0x48] sm:$0xff] }
 0x85f   :  { %v950_v3 = vpop.f32.mrb[6].mxu0 }
 0x860   :  { %v2984_v4 = vpop.f32.mrb[7].mxu0  ;;  %2990 = vmatmul.mubr.msk.f32.vlgmr.msra.gmra.mrb[2].mxu0 %vm202_vm2, %v950_v3  ;;  %v3235_v3 = vpack.c.bf16 %v105_v2, %v104_v1  ;;  %v2739_v1 = vld [vmem:[%s4069_s3 + $0x38] sm:$0xff]  ;;  %v2740_v2 = vld [vmem:[%s4069_s3 + $0x40] sm:$0xff] }
 0x861   :  { %3222 = vmatpush3.bf16.msra.mxu0 %v3219_v33  ;;  %v106_v4 = vld [vmem:[%s4072_s6 + $0x50] sm:$0xff] }
 0x862   :  { %3224 = vmatprep.subr.bf16.mxu0 %v3223_v60 }
 0x865   :  { %3226 = vmatpush3.bf16.msra.mxu0 %v3223_v60 }
 0x866   :  { %3228 = vmatprep.subr.bf16.mxu0 %v3227_v62 }
 0x869   :  { %3230 = vmatpush3.bf16.msra.mxu0 %v3227_v62 }
 0x86a   :  { %3232 = vmatprep.subr.bf16.mxu0 %v3231_v0 }
 0x86d   :  { %3234 = vmatpush3.bf16.msra.mxu0 %v3231_v0 }
 0x86e   :  { %3236 = vmatprep.subr.bf16.mxu0 %v3235_v3 }
 0x871   :  { %3238 = vmatpush3.bf16.msra.mxu0 %v3235_v3  ;;  %v3255_v3 = vpack.c.bf16 %v2740_v2, %v2739_v1 }
 0x933   :  { %v2991_v6 = vpop.f32.mrb[2].mxu0 }
 0x934   :  { %v3337_v7 = vadd.f32 %v2991_v6, %v2724_v5  ;;  %v1026_v8 = vpop.f32.mrb[3].mxu0 }
 0x935   :  { %v3338_v9 = vadd.f32 %v2724_v5, %v1026_v8  ;;  %v107_v5 = vld [vmem:[%s4072_s6 + $0x58] sm:$0xff]  ;;  %v109_v8 = vld [vmem:[%s4072_s6 + $0x68] sm:$0xff] }
 0x936   :  { %v1038_v10 = vadd.f32 %v3337_v7, %v3543_v40  ;;  %v3239_v6 = vpack.c.bf16 %v107_v5, %v106_v4  ;;  %v108_v7 = vld [vmem:[%s4072_s6 + $0x60] sm:$0xff] }
 0x937   :  { %v1037_v11 = vadd.f32 %v3338_v9, %v3539_v38  ;;  %v91_v38 = vld [vmem:[%s4071_s5] sm:$0xff]  ;;  %v3243_v9 = vpack.c.bf16 %v109_v8, %v108_v7 }
 0x938   :  { %v1042_v12 = vsel %vm39_vm0, %v1038_v10, 0.0  ;;  %v3211_v24 = vpack.c.bf16 %v92_v23, %v91_v38  ;;  %3240 = vmatprep.subr.bf16.mxu0 %v3239_v6 }
 0x939   :  { %1043 = vadd.xlane.f32.xlu0 %v1042_v12  ;;  %v1039_v13 = vsel %vm39_vm0, %v1037_v11, 0.0  ;;  %3242 = vmatpush3.bf16.msra.mxu0 %v3239_v6 }
 0x93a   :  { %1040 = vadd.xlane.f32.xlu1 %v1039_v13  ;;  %3212 = vmatprep.subr.bf16.mxu1 %v3211_v24  ;;  %v2733_v13 = vld [vmem:[%s4071_s5 + $0x20] ss:$0 sm:$0xff] }
 0x93b   :  { %3214 = vmatpush3.bf16.msra.mxu1 %v3211_v24  ;;  %3244 = vmatprep.subr.bf16.mxu0 %v3243_v9 }
 0x93c   :  { %3216 = vmatprep.subr.bf16.mxu1 %v3215_v29 }
 0x93d   :  { %3246 = vmatpush3.bf16.msra.mxu0 %v3243_v9 }
 0x93f   :  { %3218 = vmatpush3.bf16.msra.mxu1 %v3215_v29 }
 0x9c6   :  { %v1044_v14 = vpop.xlane.xlu0 %1043 }
 0x9c7   :  { %v1046_v15 = vmul.f32 0.03125, %v1044_v14  ;;  %v1041_v16 = vpop.xlane.xlu1 %1040 }
 0x9c8   :  { %v1045_v17 = vmul.f32 0.03125, %v1041_v16 }
 0x9c9   :  { %v1048_v18 = vsub.f32 %v1038_v10, %v1046_v15  ;;  %v110_v10 = vld [vmem:[%s4072_s6 + $0x70] sm:$0xff] }
 0x9ca   :  { %v1047_v19 = vsub.f32 %v1037_v11, %v1045_v17  ;;  %v111_v11 = vld [vmem:[%s4072_s6 + $0x78] sm:$0xff] }
 0x9cb   :  { %v1050_v20 = vmul.f32 %v1048_v18, %v1048_v18  ;;  %v3247_v12 = vpack.c.bf16 %v111_v11, %v110_v10  ;;  %v1289_v10 = vsub.s32 2, %v3526_v26  ;;  %v1295_v11 = vsub.s32 3, %v3526_v26  ;;  %v2609_v26 = vld [vmem:[%s4075_s9 + $0x10] sm:$0xff] }
 0x9cc   :  { %v1049_v21 = vmul.f32 %v1047_v19, %v1047_v19 }
 0x9cd   :  { %v1054_v22 = vsel %vm39_vm0, %v1050_v20, 0.0  ;;  %3248 = vmatprep.subr.bf16.mxu0 %v3247_v12 }
 0x9ce   :  { %1055 = vadd.xlane.f32.xlu1 %v1054_v22  ;;  %v1051_v40 = vsel %vm39_vm0, %v1049_v21, 0.0  ;;  %3250 = vmatpush3.bf16.msra.mxu0 %v3247_v12  ;;  %v1290_v12 = vrot.slane %v3680_v43, %v1289_v10 }
 0x9cf   :  { %1052 = vadd.xlane.f32.xlu0 %v1051_v40  ;;  %3081 = vmatprep.subr.mxu0 %v3440_v41 }
 0xa5b   :  { %v1056_v34 = vpop.xlane.xlu1 %1055 }
 0xa5c   :  { %v1058_v35 = vmul.f32 0.03125, %v1056_v34  ;;  %v1053_v36 = vpop.xlane.xlu0 %1052 }
 0xa5d   :  { %v1057_v37 = vmul.f32 0.03125, %v1053_v36 }
 0xa5e   :  { %v1060_v39 = vadd.f32 1e-12, %v1058_v35 }
 0xa5f   :  { %v1059_v42 = vadd.f32 1e-12, %v1057_v37  ;;  %v2736_v37 = vld [vmem:[%s4072_s6 + $0x80] ss:$0 sm:$0xff] }
 0xa60   :  { %3374 = vrsqrt.f32 %v1060_v39 }
 0xa61   :  { %3376 = vrsqrt.f32 %v1059_v42 }
 0xa6a   :  { %v3375_v47 = vpop.eup %3374 }
 0xa6b   :  { %v3377_v48 = vpop.eup %3376  ;;  %v1064_v49 = vmul.f32 %v3375_v47, %v1048_v18 }
 0xa6c   :  { %v1063_v51 = vmul.f32 %v3377_v48, %v1047_v19 }
 0xa6d   :  { %v1070_v53 = vmul.f32 %v1068_v45, %v1064_v49 }
 0xa6e   :  { %v1069_v54 = vmul.f32 %v1068_v45, %v1063_v51 }
 0xa6f   :  { %v3688_v57 = vadd.f32 %v1074_v52, %v1070_v53 }
 0xa70   :  { %v3686_v56 = vadd.f32 %v1074_v52, %v1069_v54 }
 0xa72   :  { %3000 = vmatprep.mubr.msk.f32.mxu1 %vm39_vm0, %v3686_v56 }
 0xa73   :  { %3001 = vmatmul.mubr.msk.f32.vlgmr.msra.gmra.mrb[12].mxu1 %vm39_vm0, %v3688_v57 }
 0xb46   :  { %v3002_v14 = vpop.f32.mrb[12].mxu1 }
 0xb47   :  { %v1159_v15 = vadd.f32 %v3002_v14, %v2733_v13  ;;  %v1153_v16 = vpop.f32.mrb[13].mxu1 }
 0xb48   :  { %v1154_v17 = vadd.f32 %v2733_v13, %v1153_v16 }
 0xb49   :  { %v1165_v18 = vmul.f32 0.044715, %v1159_v15  ;;  %v1163_v34 = vmul.f32 0.5, %v1159_v15 }
 0xb4a   :  { %v1164_v19 = vmul.f32 0.044715, %v1154_v17  ;;  %v1162_v32 = vmul.f32 0.5, %v1154_v17 }
 0xb4b   :  { %v1167_v20 = vmul.f32 %v1165_v18, %v1159_v15 }
 0xb4c   :  { %v1166_v21 = vmul.f32 %v1164_v19, %v1154_v17 }
 0xb4d   :  { %v1169_v22 = vmul.f32 %v1167_v20, %v1159_v15 }
 0xb4e   :  { %v1168_v40 = vmul.f32 %v1166_v21, %v1154_v17 }
 0xb4f   :  { %v1171_v38 = vadd.f32 %v1169_v22, %v1159_v15  ;;  %v2770_v22 = vld [vmem:[%s4069_s3 + $0x48] ss:$0 sm:$0xff] }
 0xb50   :  { %v1170_v23 = vadd.f32 %v1168_v40, %v1154_v17  ;;  %v1296_v17 = vrot.slane %v3680_v43, %v1295_v11 }
 0xb51   :  { %v1173_v24 = vmul.f32 0.7978846, %v1171_v38 }
 0xb52   :  { %v1172_v25 = vmul.f32 0.7978846, %v1170_v23 }
 0xb53   :  { %3378 = vtanh.f32 %v1173_v24 }
 0xb54   :  { %3380 = vtanh.f32 %v1172_v25 }
 0xb5d   :  { %v3379_v27 = vpop.eup %3378 }
 0xb5e   :  { %v3381_v29 = vpop.eup %3380  ;;  %v1177_v31 = vadd.f32 1.0, %v3379_v27 }
 0xb5f   :  { %v1176_v33 = vadd.f32 1.0, %v3381_v29 }
 0xb60   :  { %v1179_v36 = vmul.f32 %v1177_v31, %v1163_v34 }
 0xb61   :  { %v1178_v35 = vmul.f32 %v1176_v33, %v1162_v32 }
 0xb63   :  { %3035 = vmatprep.mubr.f32.mxu0 %v1178_v35 }
 0xb64   :  { %3036 = vmatmul.mubr.f32.vlgmr.msra.gmra.mrb[8].mxu0 %v1179_v36 }
 0xb65   :  { %3083 = vmatprep.mubr.msk.f32.mxu0 %vm3441_vm1, %v3440_v41 }
 0xc37   :  { %v3037_v39 = vpop.f32.mrb[8].mxu0 }
 0xc38   :  { %v1256_v42 = vadd.f32 %v3037_v39, %v2736_v37  ;;  %v1250_v45 = vpop.f32.mrb[9].mxu0 }
 0xc39   :  { %v1251_v47 = vadd.f32 %v2736_v37, %v1250_v45 }
 0xc3a   :  { %v1260_v48 = vadd.f32 %v1256_v42, %v3688_v57 }
 0xc3b   :  { %v1259_v49 = vadd.f32 %v1251_v47, %v3686_v56  ;;  %v2737_v56 = vld [vmem:[%s4069_s3 + $0x28] sm:$0xff] }
 0xc3c   :  { %v1264_v51 = vsel %vm39_vm0, %v1260_v48, 0.0  ;;  %v3251_v0 = vpack.c.bf16 %v2738_v46, %v2737_v56 }
 0xc3d   :  { %1265 = vadd.xlane.f32.xlu1 %v1264_v51  ;;  %v1261_v52 = vsel %vm39_vm0, %v1259_v49, 0.0 }
 0xc3e   :  { %1262 = vadd.xlane.f32.xlu0 %v1261_v52  ;;  %3252 = vmatprep.subr.bf16.mxu1 %v3251_v0 }
 0xc3f   :  { %3254 = vmatpush3.bf16.msra.mxu1 %v3251_v0 }
 0xc40   :  { %3256 = vmatprep.subr.bf16.mxu1 %v3255_v3 }
 0xc43   :  { %3258 = vmatpush3.bf16.msra.mxu1 %v3255_v3 }
 0xc44   :  { %3049 = vmatprep.subr.mxu1 %v3440_v41 }
 0xcca   :  { %v1266_v53 = vpop.xlane.xlu1 %1265 }
 0xccb   :  { %v1268_v54 = vmul.f32 0.03125, %v1266_v53  ;;  %v1263_v58 = vpop.xlane.xlu0 %1262 }
 0xccc   :  { %v1267_v59 = vmul.f32 0.03125, %v1263_v58 }
 0xccd   :  { %v1270_v60 = vsub.f32 %v1260_v48, %v1268_v54 }
 0xcce   :  { %v1269_v44 = vsub.f32 %v1259_v49, %v1267_v59 }
 0xccf   :  { %v1272_v61 = vmul.f32 %v1270_v60, %v1270_v60 }
 0xcd0   :  { %v1271_v62 = vmul.f32 %v1269_v44, %v1269_v44 }
 0xcd1   :  { %v1276_v63 = vsel %vm39_vm0, %v1272_v61, 0.0 }
 0xcd2   :  { %1277 = vadd.xlane.f32.xlu1 %v1276_v63  ;;  %v1273_v57 = vsel %vm39_vm0, %v1271_v62, 0.0  ;;  %v2742_v62 = vld [vmem:[%s4070_s4 + $0x28] sm:$0xff]  ;;  %v2743_v63 = vld [vmem:[%s4070_s4 + $0x30] sm:$0xff] }
 0xcd3   :  { %1274 = vadd.xlane.f32.xlu0 %v1273_v57  ;;  %v3259_v0 = vpack.c.bf16 %v2743_v63, %v2742_v62 }
 0xd5f   :  { %v1278_v4 = vpop.xlane.xlu1 %1277 }
 0xd60   :  { %v1280_v5 = vmul.f32 0.03125, %v1278_v4  ;;  %v1275_v6 = vpop.xlane.xlu0 %1274 }
 0xd61   :  { %v1279_v7 = vmul.f32 0.03125, %v1275_v6 }
 0xd62   :  { %v1282_v8 = vadd.f32 1e-12, %v1280_v5 }
 0xd63   :  { %v1281_v9 = vadd.f32 1e-12, %v1279_v7 }
 0xd64   :  { %3382 = vrsqrt.f32 %v1282_v8 }
 0xd65   :  { %3384 = vrsqrt.f32 %v1281_v9 }
 0xd6e   :  { %v3383_v13 = vpop.eup %3382 }
 0xd6f   :  { %v3385_v14 = vpop.eup %3384  ;;  %v1286_v15 = vmul.f32 %v3383_v13, %v1270_v60 }
 0xd70   :  { %v1285_v16 = vmul.f32 %v3385_v14, %v1269_v44 }
 0xd71   :  { %v1292_v18 = vmul.f32 %v1290_v12, %v1286_v15 }
 0xd72   :  { %v1291_v19 = vmul.f32 %v1290_v12, %v1285_v16 }
 0xd73   :  { %v3774_v21 = vadd.f32 %v1296_v17, %v1292_v18 }
 0xd74   :  { %v3772_v20 = vadd.f32 %v1296_v17, %v1291_v19 }
 0xd76   :  { %3046 = vmatprep.mubr.msk.f32.mxu1 %vm39_vm0, %v3772_v20 }
 0xd77   :  { %3047 = vmatmul.mubr.msk.f32.vlgmr.msra.gmra.mrb[14].mxu1 %vm39_vm0, %v3774_v21 }
 0xd78   :  { %3051 = vmatprep.mubr.msk.f32.mxu1 %vm3441_vm1, %v3440_v41 }
 0xe4a   :  { %v3048_v43 = vpop.f32.mrb[14].mxu1 }
 0xe4b   :  { %v3785_v40 = vadd.f32 %v3048_v43, %v2770_v22  ;;  %v1413_v38 = vpop.f32.mrb[15].mxu1 }
 0xe4c   :  { %v3787_v23 = vadd.f32 %v2770_v22, %v1413_v38 }
 0xe4d   :  { %1500 = vrot.lane.b32.xlu1 %v3785_v40, %s3442_s27 }
 0xe4e   :  { %1423 = vrot.lane.b32.xlu0 %v3787_v23, %s3442_s27 }
 0xebf   :  { %v1501_v25 = vpop.permute.xlu1 %1500 }
 0xec0   :  { %v1424_v24 = vpop.permute.xlu0 %1423 }
 0xec1   :  { %3050 = vmatpush3.xpose.msk.msra.mxu1 %vm202_vm2, %v1424_v24 }
 0xec2   :  { %3054 = vmatprep.subr.mxu1 %v3440_v41 }
 0xec4   :  { %3052 = vmatmul.mubr.msk.f32.vlgmr.msra.gmra.mrb[16].mxu1 %vm202_vm2, %v3787_v23 }
 0xec5   :  { %3055 = vmatpush3.xpose.msk.msra.mxu1 %vm202_vm2, %v1501_v25  ;;  %3056 = vmatprep.mubr.msk.f32.mxu1 %vm3441_vm1, %v3440_v41 }
 0xec6   :  { %3059 = vmatprep.subr.mxu1 %v3440_v41 }
 0xec8   :  { %3057 = vmatmul.mubr.msk.f32.vlgmr.msra.gmra.mrb[18].mxu1 %vm202_vm2, %v3785_v40 }
 0xec9   :  { %3061 = vmatprep.mubr.msk.f32.mxu1 %vm3441_vm1, %v3440_v41 }
 0xf97   :  { %v1495_v27 = vpop.f32.mrb[16].mxu1 }
 0xf98   :  { %v1576_v29 = vmul.f32 0.25, %v1495_v27  ;;  %v3053_v31 = vpop.f32.mrb[17].mxu1 }
 0xf9a   :  { %v1578_v32 = vadd.f32 %v1576_v29, %v3579_v50 }
 0xf9b   :  { %v1572_v33 = vpop.f32.mrb[18].mxu1 }
 0xf9c   :  { %v1577_v34 = vmul.f32 0.25, %v1572_v33  ;;  %v3058_v35 = vpop.f32.mrb[19].mxu1  ;;  %v1580_v36 = vsel %vm358_vm3, %v1578_v32, -inf }
 0xf9d   :  { %1581 = vmax.xlane.f32.xlu1 %v1580_v36 }
 0xf9e   :  { %v1579_v37 = vadd.f32 %v1577_v34, %v3585_v55 }
 0xfa0   :  { %v1583_v39 = vsel %vm358_vm3, %v1579_v37, -inf }
 0xfa1   :  { %1584 = vmax.xlane.f32.xlu0 %v1583_v39  ;;  %v2745_v39 = vld [vmem:[%s4070_s4 + $0x40] sm:$0xff] }
0x102a   :  { %v1582_v42 = vpop.xlane.xlu1 %1581 }
0x102b   :  { %v1586_v45 = vsub.f32 %v1578_v32, %v1582_v42 }
0x102d   :  { %v1588_v47 = vmul.f32 1.442695, %v1586_v45 }
0x102e   :  { %v1585_v48 = vpop.xlane.xlu0 %1584 }
0x102f   :  { %3386 = vpow2.f32 %v1588_v47  ;;  %v1587_v49 = vsub.f32 %v1579_v37, %v1585_v48 }
0x1031   :  { %v1590_v51 = vmul.f32 1.442695, %v1587_v49 }
0x1033   :  { %3388 = vpow2.f32 %v1590_v51 }
0x1039   :  { %v3387_v52 = vpop.eup %3386 }
0x103a   :  { %v1592_v53 = vsel %vm358_vm3, %v3387_v52, 0.0 }
0x103b   :  { %1593 = vadd.xlane.f32.xlu0 %v1592_v53 }
0x103d   :  { %v3389_v54 = vpop.eup %3388 }
0x103e   :  { %v1595_v58 = vsel %vm358_vm3, %v3389_v54, 0.0 }
0x103f   :  { %1596 = vadd.xlane.f32.xlu1 %v1595_v58 }
0x1050   :  { %1678 = vrot.lane.b32.xlu1 %v3785_v40, %s3443_s1 }
0x1051   :  { %1602 = vrot.lane.b32.xlu0 %v3787_v23, %s3443_s1 }
0x1054   :  { %1843 = vrot.lane.b32.xlu1 %v3787_v23, %s3444_s12 }
0x1055   :  { %1841 = vrot.lane.b32.xlu0 %v3787_v23, %s3445_s13 }
0x1058   :  { %1921 = vrot.lane.b32.xlu1 %v3785_v40, %s3444_s12 }
0x105c   :  { %1919 = vrot.lane.b32.xlu1 %v3785_v40, %s3445_s13 }
0x10c8   :  { %v1594_v59 = vpop.xlane.xlu0 %1593 }
0x10c9   :  { %3390 = vrcp.f32 %v1594_v59 }
0x10cc   :  { %v1597_v60 = vpop.xlane.xlu1 %1596  ;;  %v1603_v44 = vpop.permute.xlu0 %1602 }
0x10cd   :  { %3392 = vrcp.f32 %v1597_v60  ;;  %3060 = vmatpush3.msra.mxu1 %v1603_v44 }
0x10ce   :  { %3064 = vmatprep.subr.mxu1 %v3440_v41 }
0x10d0   :  { %v1679_v61 = vpop.permute.xlu1 %1678  ;;  %v1842_v12 = vpop.permute.xlu0 %1841 }
0x10d3   :  { %v3391_v57 = vpop.eup %3390 }
0x10d4   :  { %v1600_v56 = vmul.f32 %v3391_v57, %v3387_v52  ;;  %v1844_v46 = vpop.permute.xlu1 %1843 }
0x10d6   :  { %3062 = vmatmul.mubr.msk.f32.vlgmr.msra.gmra.mrb[20].mxu1 %vm358_vm3, %v1600_v56 }
0x10d7   :  { %v3393_v1 = vpop.eup %3392  ;;  %3065 = vmatpush3.msra.mxu1 %v1679_v61  ;;  %3066 = vmatprep.mubr.msk.f32.mxu1 %vm3441_vm1, %v3440_v41 }
0x10d8   :  { %v1601_v2 = vmul.f32 %v3393_v1, %v3389_v54  ;;  %v1922_v3 = vpop.permute.xlu1 %1921  ;;  %3260 = vmatprep.subr.bf16.mxu1 %v3259_v0  ;;  %v2781_v54 = vld [vmem:[%s4070_s4 + $0x48] ss:$0 sm:$0xff] }
0x10d9   :  { %3082 = vmatpush3.xpose.msk.msra.mxu0 %vm202_vm2, %v1922_v3 }
0x10da   :  { %3067 = vmatmul.mubr.msk.f32.vlgmr.msra.gmra.mrb[22].mxu1 %vm358_vm3, %v1601_v2  ;;  %3091 = vmatprep.subr.mxu0 %v3440_v41 }
0x10db   :  { %3262 = vmatpush3.bf16.msra.mxu1 %v3259_v0 }
0x10dc   :  { %v1920_v4 = vpop.permute.xlu1 %1919  ;;  %3076 = vmatprep.subr.mxu1 %v3440_v41 }
0x10dd   :  { %3084 = vmatmul.mubr.msk.f32.vlgmr.msra.gmra.mrb[10].mxu0 %vm202_vm2, %v1920_v4 }
0x10de   :  { %3093 = vmatprep.mubr.msk.f32.mxu0 %vm3441_vm1, %v3440_v41 }
0x11a9   :  { %v1674_v5 = vpop.f32.mrb[20].mxu1 }
0x11aa   :  { %v3063_v6 = vpop.f32.mrb[21].mxu1  ;;  %3073 = vmatprep.mubr.msk.f32.mxu1 %vm202_vm2, %v1674_v5 }
0x11ad   :  { %v1750_v7 = vpop.f32.mrb[22].mxu1 }
0x11ae   :  { %v3068_v8 = vpop.f32.mrb[23].mxu1  ;;  %3074 = vmatmul.mubr.msk.f32.vlgmr.msra.gmra.mrb[24].mxu1 %vm202_vm2, %v1750_v7  ;;  %v2748_v7 = vld [vmem:[%s4071_s5 + $0x30] sm:$0xff] }
0x11af   :  { %3077 = vmatpush3.xpose.msk.msra.mxu1 %vm202_vm2, %v1844_v46  ;;  %3078 = vmatprep.mubr.msk.f32.mxu1 %vm3441_vm1, %v3440_v41 }
0x11b0   :  { %v1993_v9 = vpop.f32.mrb[10].mxu0  ;;  %3086 = vmatprep.subr.mxu1 %v3440_v41 }
0x11b1   :  { %v1998_v13 = vmul.f32 0.25, %v1993_v9  ;;  %v3085_v14 = vpop.f32.mrb[11].mxu0  ;;  %v2749_v9 = vld [vmem:[%s4071_s5 + $0x38] sm:$0xff] }
0x11b2   :  { %3079 = vmatmul.mubr.msk.f32.vlgmr.msra.gmra.mrb[26].mxu1 %vm202_vm2, %v1842_v12  ;;  %v2750_v12 = vld [vmem:[%s4071_s5 + $0x40] sm:$0xff]  ;;  %v2752_v14 = vld [vmem:[%s4072_s6 + $0x88] sm:$0xff] }
0x11b3   :  { %v2000_v15 = vadd.f32 %v1998_v13, %v3585_v55  ;;  %3088 = vmatprep.mubr.msk.f32.mxu1 %vm3441_vm1, %v3440_v41  ;;  %v3271_v13 = vpack.c.bf16 %v2750_v12, %v2749_v9 }
0x11b5   :  { %v2004_v16 = vsel %vm358_vm3, %v2000_v15, -inf }
0x11b6   :  { %2005 = vmax.xlane.f32.xlu1 %v2004_v16 }
0x11c7   :  { %2099 = vrot.lane.b32.xlu1 %v3785_v40, %s3446_s17 }
0x1243   :  { %v2006_v17 = vpop.xlane.xlu1 %2005 }
0x1244   :  { %v2008_v19 = vsub.f32 %v2000_v15, %v2006_v17  ;;  %v2753_v15 = vld [vmem:[%s4072_s6 + $0x90] sm:$0xff] }
0x1245   :  { %v3275_v16 = vpack.c.bf16 %v2753_v15, %v2752_v14 }
0x1246   :  { %v2011_v22 = vmul.f32 1.442695, %v2008_v19 }
0x1247   :  { %v2100_v18 = vpop.permute.xlu1 %2099 }
0x1248   :  { %3092 = vmatpush3.msra.mxu0 %v2100_v18  ;;  %3394 = vpow2.f32 %v2011_v22 }
0x1252   :  { %v3395_v27 = vpop.eup %3394 }
0x1253   :  { %v2016_v29 = vsel %vm358_vm3, %v3395_v27, 0.0 }
0x1285   :  { %v1915_v43 = vpop.f32.mrb[26].mxu1 }
0x1286   :  { %v1997_v38 = vmul.f32 0.25, %v1915_v43  ;;  %v3080_v24 = vpop.f32.mrb[27].mxu1 }
0x1287   :  { %v3899_v24 = vld [vmem:[%s4073_s7 + $0x4] sm:$0xf] }
0x1288   :  { %v1999_v55 = vadd.f32 %v1997_v38, %v3579_v50  ;;  %v2744_v50 = vld [vmem:[%s4070_s4 + $0x38] sm:$0xff] }
0x1289   :  { %v3263_v45 = vpack.c.bf16 %v2745_v39, %v2744_v50  ;;  %v2757_v50 = vld [vmem:[%s4072_s6 + $0xb0] sm:$0xff] }
0x128a   :  { %v2001_v25 = vsel %vm358_vm3, %v1999_v55, -inf }
0x128b   :  { %2002 = vmax.xlane.f32.xlu0 %v2001_v25 }
0x128f   :  { %2017 = vadd.xlane.f32.xlu0 %v2016_v29 }
0x1318   :  { %v2003_v31 = vpop.xlane.xlu0 %2002 }
0x1319   :  { %v2007_v40 = vsub.f32 %v1999_v55, %v2003_v31  ;;  %v2289_v55 = vrot.slane %v3899_v24, %v3529_v28  ;;  %v2754_v28 = vld [vmem:[%s4072_s6 + $0x98] sm:$0xff] }
0x131b   :  { %v2009_v32 = vmul.f32 1.442695, %v2007_v40  ;;  %v2295_v40 = vrot.slane %v3899_v24, %v3535_v30  ;;  %v2755_v30 = vld [vmem:[%s4072_s6 + $0xa0] sm:$0xff] }
0x131c   :  { %v2018_v33 = vpop.xlane.xlu0 %2017 }
0x131d   :  { %3396 = vpow2.f32 %v2009_v32 }
0x131e   :  { %3398 = vrcp.f32 %v2018_v33 }
0x1327   :  { %v3397_v34 = vpop.eup %3396 }
0x1328   :  { %v3399_v35 = vpop.eup %3398  ;;  %v2013_v36 = vsel %vm358_vm3, %v3397_v34, 0.0 }
0x1329   :  { %v2022_v37 = vmul.f32 %v3399_v35, %v3395_v27  ;;  %2014 = vadd.xlane.f32.xlu0 %v2013_v36  ;;  %v3279_v36 = vpack.c.bf16 %v2755_v30, %v2754_v28 }
0x132b   :  { %3094 = vmatmul.mubr.msk.f32.vlgmr.msra.gmra.mrb[12].mxu0 %vm358_vm3, %v2022_v37  ;;  %v2756_v37 = vld [vmem:[%s4072_s6 + $0xa8] sm:$0xff] }
0x132c   :  { %v3283_v39 = vpack.c.bf16 %v2757_v50, %v2756_v37 }
0x133f   :  { %2023 = vrot.lane.b32.xlu0 %v3787_v23, %s3446_s17 }
0x13b6   :  { %v2015_v42 = vpop.xlane.xlu0 %2014 }
0x13b7   :  { %3400 = vrcp.f32 %v2015_v42  ;;  %v2758_v42 = vld [vmem:[%s4072_s6 + $0xb8] sm:$0xff] }
0x13ba   :  { %v2024_v47 = vpop.permute.xlu0 %2023 }
0x13bb   :  { %3087 = vmatpush3.msra.mxu1 %v2024_v47 }
0x13bc   :  { %3264 = vmatprep.subr.bf16.mxu1 %v3263_v45 }
0x13c1   :  { %v3401_v48 = vpop.eup %3400 }
0x13c2   :  { %v2021_v49 = vmul.f32 %v3401_v48, %v3397_v34  ;;  %v2760_v48 = vld [vmem:[%s4072_s6 + $0xc8] sm:$0xff] }
0x13c4   :  { %3089 = vmatmul.mubr.msk.f32.vlgmr.msra.gmra.mrb[28].mxu1 %vm358_vm3, %v2021_v49  ;;  %v2761_v49 = vld [vmem:[%s4072_s6 + $0xd0] sm:$0xff] }
0x13c5   :  { %3266 = vmatpush3.bf16.msra.mxu1 %v3263_v45  ;;  %v2759_v45 = vld [vmem:[%s4072_s6 + $0xc0] sm:$0xff] }
0x13c6   :  { %3276 = vmatprep.subr.bf16.mxu1 %v3275_v16  ;;  %v3287_v47 = vpack.c.bf16 %v2759_v45, %v2758_v42  ;;  %v2522_v45 = vld [vmem:[%s4074_s8 + $0x10] sm:$0xff] }
0x13fe   :  { %v2171_v23 = vpop.f32.mrb[12].mxu0 }
0x13ff   :  { %v3095_v51 = vpop.f32.mrb[13].mxu0 }
0x1400   :  { %v2762_v51 = vld [vmem:[%s4072_s6 + $0xd8] sm:$0xff] }
0x1497   :  { %v2095_v52 = vpop.f32.mrb[28].mxu1 }
0x1498   :  { %v3090_v53 = vpop.f32.mrb[29].mxu1  ;;  %3100 = vmatprep.mubr.msk.f32.mxu1 %vm202_vm2, %v2095_v52  ;;  %v2763_v52 = vld [vmem:[%s4072_s6 + $0xe0] sm:$0xff] }
0x1499   :  { %3101 = vmatmul.mubr.msk.f32.vlgmr.msra.gmra.mrb[24].mxu1 %vm202_vm2, %v2171_v23  ;;  %v3291_v23 = vpack.c.bf16 %v2761_v49, %v2760_v48  ;;  %v3295_v53 = vpack.c.bf16 %v2763_v52, %v2762_v51  ;;  %v3447_v48 = vmov 0.0|0.0  }
0x149a   :  { %3278 = vmatpush3.bf16.msra.mxu1 %v3275_v16 }
0x149b   :  { %3280 = vmatprep.subr.bf16.mxu1 %v3279_v36 }
0x149e   :  { %3282 = vmatpush3.bf16.msra.mxu1 %v3279_v36 }
0x149f   :  { %3284 = vmatprep.subr.bf16.mxu1 %v3283_v39 }
0x14a2   :  { %3286 = vmatpush3.bf16.msra.mxu1 %v3283_v39  ;;  %v2521_v39 = vld [vmem:[%s4074_s8 + $0x8] sm:$0xff] }
0x14a3   :  { %3288 = vmatprep.subr.bf16.mxu1 %v3287_v47 }
0x14a6   :  { %3290 = vmatpush3.bf16.msra.mxu1 %v3287_v47  ;;  %v2523_v47 = vld [vmem:[%s4074_s8 + $0x18] sm:$0xff] }
0x14a7   :  { %3292 = vmatprep.subr.bf16.mxu1 %v3291_v23  ;;  %v3311_v49 = vpack.c.bf16 %v2523_v47, %v2522_v45 }
0x14aa   :  { %3294 = vmatpush3.bf16.msra.mxu1 %v3291_v23 }
0x14ab   :  { %3296 = vmatprep.subr.bf16.mxu1 %v3295_v53 }
0x14ae   :  { %3298 = vmatpush3.bf16.msra.mxu1 %v3295_v53 }
0x156c   :  { %v3102_v58 = vpop.f32.mrb[24].mxu1 }
0x156d   :  { %v3339_v59 = vadd.f32 %v3102_v58, %v2781_v54  ;;  %v2247_v60 = vpop.f32.mrb[25].mxu1  ;;  %v2765_v58 = vld [vmem:[%s4072_s6 + $0xf0] sm:$0xff] }
0x156e   :  { %v3340_v44 = vadd.f32 %v2781_v54, %v2247_v60  ;;  %v2764_v54 = vld [vmem:[%s4072_s6 + $0xe8] sm:$0xff]  ;;  %v2766_v60 = vld [vmem:[%s4072_s6 + $0xf8] sm:$0xff] }
0x156f   :  { %v2259_v61 = vadd.f32 %v3339_v59, %v3774_v21  ;;  %v3299_v59 = vpack.c.bf16 %v2765_v58, %v2764_v54 }
0x1570   :  { %v2258_v62 = vadd.f32 %v3340_v44, %v3772_v20  ;;  %v2747_v20 = vld [vmem:[%s4071_s5 + $0x28] sm:$0xff]  ;;  %v2767_v44 = vld [vmem:[%s4072_s6 + $0x100] sm:$0xff] }
0x1571   :  { %v2263_v63 = vsel %vm39_vm0, %v2259_v61, 0.0  ;;  %v3267_v8 = vpack.c.bf16 %v2748_v7, %v2747_v20  ;;  %3300 = vmatprep.subr.bf16.mxu1 %v3299_v59 }
0x1572   :  { %2264 = vadd.xlane.f32.xlu0 %v2263_v63  ;;  %v2260_v57 = vsel %vm39_vm0, %v2258_v62, 0.0  ;;  %3302 = vmatpush3.bf16.msra.mxu1 %v3299_v59  ;;  %v2511_v59 = vrot.slane %v3899_v24, %v1289_v10 }
0x1573   :  { %2261 = vadd.xlane.f32.xlu1 %v2260_v57  ;;  %3268 = vmatprep.subr.bf16.mxu0 %v3267_v8 }
0x1574   :  { %3270 = vmatpush3.bf16.msra.mxu0 %v3267_v8 }
0x1575   :  { %3272 = vmatprep.subr.bf16.mxu0 %v3271_v13 }
0x1578   :  { %3274 = vmatpush3.bf16.msra.mxu0 %v3271_v13 }
0x1579   :  { %3307 = vmatprep.subr.bf16.mxu0 %v3447_v48 }
0x15ff   :  { %v2265_v56 = vpop.xlane.xlu0 %2264 }
0x1600   :  { %v2267_v46 = vmul.f32 0.03125, %v2265_v56  ;;  %v2262_v0 = vpop.xlane.xlu1 %2261 }
0x1601   :  { %v2266_v1 = vmul.f32 0.03125, %v2262_v0 }
0x1602   :  { %v2269_v2 = vsub.f32 %v2259_v61, %v2267_v46  ;;  %v3303_v61 = vpack.c.bf16 %v2767_v44, %v2766_v60 }
0x1603   :  { %v2268_v3 = vsub.f32 %v2258_v62, %v2266_v1  ;;  %v2790_v62 = vld [vmem:[%s4071_s5 + $0x48] ss:$0 sm:$0xff] }
0x1604   :  { %v2271_v4 = vmul.f32 %v2269_v2, %v2269_v2  ;;  %3304 = vmatprep.subr.bf16.mxu1 %v3303_v61 }
0x1605   :  { %v2270_v5 = vmul.f32 %v2268_v3, %v2268_v3  ;;  %3306 = vmatpush3.bf16.msra.mxu1 %v3303_v61 }
0x1606   :  { %v2275_v6 = vsel %vm39_vm0, %v2271_v4, 0.0 }
0x1607   :  { %2276 = vadd.xlane.f32.xlu1 %v2275_v6  ;;  %v2272_v21 = vsel %vm39_vm0, %v2270_v5, 0.0 }
0x1608   :  { %2273 = vadd.xlane.f32.xlu0 %v2272_v21 }
0x1694   :  { %v2277_v17 = vpop.xlane.xlu1 %2276 }
0x1695   :  { %v2279_v18 = vmul.f32 0.03125, %v2277_v17  ;;  %v2274_v19 = vpop.xlane.xlu0 %2273 }
0x1696   :  { %v2278_v22 = vmul.f32 0.03125, %v2274_v19 }
0x1697   :  { %v2281_v43 = vadd.f32 1e-12, %v2279_v18  ;;  %v2793_v18 = vld [vmem:[%s4072_s6 + $0x108] ss:$0 sm:$0xff] }
0x1698   :  { %v2280_v38 = vadd.f32 1e-12, %v2278_v22 }
0x1699   :  { %3402 = vrsqrt.f32 %v2281_v43 }
0x169a   :  { %3404 = vrsqrt.f32 %v2280_v38 }
0x16a3   :  { %v3403_v25 = vpop.eup %3402 }
0x16a4   :  { %v3405_v27 = vpop.eup %3404  ;;  %v2285_v29 = vmul.f32 %v3403_v25, %v2269_v2 }
0x16a5   :  { %v2284_v31 = vmul.f32 %v3405_v27, %v2268_v3 }
0x16a6   :  { %v2291_v32 = vmul.f32 %v2289_v55, %v2285_v29 }
0x16a7   :  { %v2290_v33 = vmul.f32 %v2289_v55, %v2284_v31 }
0x16a8   :  { %v3907_v35 = vadd.f32 %v2295_v40, %v2291_v32 }
0x16a9   :  { %v3905_v34 = vadd.f32 %v2295_v40, %v2290_v33 }
0x16ab   :  { %3111 = vmatprep.mubr.msk.f32.mxu0 %vm39_vm0, %v3905_v34 }
0x16ac   :  { %3112 = vmatmul.mubr.msk.f32.vlgmr.msra.gmra.mrb[14].mxu0 %vm39_vm0, %v3907_v35 }
0x16ad   :  { %3157 = vmatprep.mubr.msk.f32.mxu0 %vm3441_vm1, %v3440_v41 }
0x177f   :  { %v3113_v63 = vpop.f32.mrb[14].mxu0 }
0x1780   :  { %v2380_v57 = vadd.f32 %v3113_v63, %v2790_v62  ;;  %v2374_v56 = vpop.f32.mrb[15].mxu0 }
0x1781   :  { %v2375_v46 = vadd.f32 %v2790_v62, %v2374_v56  ;;  %v2517_v62 = vrot.slane %v3899_v24, %v1295_v11  ;;  %v2610_v11 = vld [vmem:[%s4075_s9 + $0x18] sm:$0xff] }
0x1782   :  { %v2386_v0 = vmul.f32 0.044715, %v2380_v57  ;;  %v2384_v15 = vmul.f32 0.5, %v2380_v57 }
0x1783   :  { %v2385_v1 = vmul.f32 0.044715, %v2375_v46  ;;  %v2383_v13 = vmul.f32 0.5, %v2375_v46 }
0x1784   :  { %v2388_v2 = vmul.f32 %v2386_v0, %v2380_v57  ;;  %v2608_v0 = vld [vmem:[%s4075_s9 + $0x8] sm:$0xff] }
0x1785   :  { %v2387_v3 = vmul.f32 %v2385_v1, %v2375_v46 }
0x1786   :  { %v2390_v4 = vmul.f32 %v2388_v2, %v2380_v57 }
0x1787   :  { %v2389_v5 = vmul.f32 %v2387_v3, %v2375_v46 }
0x1788   :  { %v2392_v6 = vadd.f32 %v2390_v4, %v2380_v57  ;;  %v3317_v4 = vpack.c.bf16 %v2610_v11, %v2609_v26 }
0x1789   :  { %v2391_v21 = vadd.f32 %v2389_v5, %v2375_v46  ;;  %v2607_v46 = vld [vmem:[%s4075_s9] sm:$0xff] }
0x178a   :  { %v2394_v20 = vmul.f32 0.7978846, %v2392_v6  ;;  %v3314_v3 = vpack.c.bf16 %v2608_v0, %v2607_v46  ;;  %v2611_v5 = vld [vmem:[%s4075_s9 + $0x20] sm:$0xff]  ;;  %v2612_v6 = vld [vmem:[%s4075_s9 + $0x28] sm:$0xff] }
0x178b   :  { %v2393_v7 = vmul.f32 0.7978846, %v2391_v21  ;;  %v3320_v21 = vpack.c.bf16 %v2612_v6, %v2611_v5 }
0x178c   :  { %3406 = vtanh.f32 %v2394_v20  ;;  %v2613_v20 = vld [vmem:[%s4075_s9 + $0x30] sm:$0xff] }
0x178d   :  { %3408 = vtanh.f32 %v2393_v7 }
0x1796   :  { %v3407_v8 = vpop.eup %3406 }
0x1797   :  { %v3409_v9 = vpop.eup %3408  ;;  %v2398_v12 = vadd.f32 1.0, %v3407_v8  ;;  %v2615_v8 = vld [vmem:[%s4075_s9 + $0x40] sm:$0xff] }
0x1798   :  { %v2397_v14 = vadd.f32 1.0, %v3409_v9  ;;  %v2616_v9 = vld [vmem:[%s4075_s9 + $0x48] sm:$0xff] }
0x1799   :  { %v2400_v17 = vmul.f32 %v2398_v12, %v2384_v15  ;;  %v3326_v12 = vpack.c.bf16 %v2616_v9, %v2615_v8 }
0x179a   :  { %v2399_v16 = vmul.f32 %v2397_v14, %v2383_v13  ;;  %v2617_v13 = vld [vmem:[%s4075_s9 + $0x50] sm:$0xff]  ;;  %v2618_v14 = vld [vmem:[%s4075_s9 + $0x58] sm:$0xff] }
0x179b   :  { %v3329_v15 = vpack.c.bf16 %v2618_v14, %v2617_v13 }
0x179c   :  { %3146 = vmatprep.mubr.f32.mxu1 %v2399_v16  ;;  %v2619_v16 = vld [vmem:[%s4075_s9 + $0x60] sm:$0xff] }
0x179d   :  { %3147 = vmatmul.mubr.f32.vlgmr.msra.gmra.mrb[30].mxu1 %v2400_v17  ;;  %v2620_v17 = vld [vmem:[%s4075_s9 + $0x68] sm:$0xff] }
0x1870   :  { %v3148_v19 = vpop.f32.mrb[30].mxu1 }
0x1871   :  { %v2477_v22 = vadd.f32 %v3148_v19, %v2793_v18  ;;  %v2471_v43 = vpop.f32.mrb[31].mxu1  ;;  %v2621_v19 = vld [vmem:[%s4075_s9 + $0x70] sm:$0xff] }
0x1872   :  { %v2472_v38 = vadd.f32 %v2793_v18, %v2471_v43  ;;  %v3332_v18 = vpack.c.bf16 %v2620_v17, %v2619_v16 }
0x1873   :  { %v2481_v55 = vadd.f32 %v2477_v22, %v3907_v35  ;;  %v2622_v22 = vld [vmem:[%s4075_s9 + $0x78] sm:$0xff] }
0x1874   :  { %v2480_v25 = vadd.f32 %v2472_v38, %v3905_v34  ;;  %v2520_v34 = vld [vmem:[%s4074_s8] sm:$0xff]  ;;  %v3335_v43 = vpack.c.bf16 %v2622_v22, %v2621_v19 }
0x1875   :  { %v2485_v27 = vsel %vm39_vm0, %v2481_v55, 0.0  ;;  %v3308_v42 = vpack.c.bf16 %v2521_v39, %v2520_v34  ;;  %v2794_v38 = vld [vmem:[%s4074_s8 + $0x20] ss:$0 sm:$0xff] }
0x1876   :  { %2486 = vadd.xlane.f32.xlu0 %v2485_v27  ;;  %v2482_v29 = vsel %vm39_vm0, %v2480_v25, 0.0 }
0x1877   :  { %2483 = vadd.xlane.f32.xlu1 %v2482_v29  ;;  %3309 = vmatpush3.bf16.msra.mxu0 %v3308_v42 }
0x1878   :  { %3310 = vmatprep.subr.bf16.mxu0 %v3447_v48 }
0x187b   :  { %3312 = vmatpush3.bf16.msra.mxu0 %v3311_v49 }
0x187c   :  { %3313 = vmatprep.subr.bf16.mxu0 %v3447_v48 }
0x1903   :  { %v2487_v31 = vpop.xlane.xlu0 %2486 }
0x1904   :  { %v2489_v40 = vmul.f32 0.03125, %v2487_v31  ;;  %v2484_v32 = vpop.xlane.xlu1 %2483  ;;  %v2796_v31 = vld [vmem:[%s4075_s9 + $0x80] ss:$0 sm:$0xff] }
0x1905   :  { %v2488_v33 = vmul.f32 0.03125, %v2484_v32 }
0x1906   :  { %v2491_v28 = vsub.f32 %v2481_v55, %v2489_v40 }
0x1907   :  { %v2490_v30 = vsub.f32 %v2480_v25, %v2488_v33 }
0x1908   :  { %v2493_v36 = vmul.f32 %v2491_v28, %v2491_v28 }
0x1909   :  { %v2492_v37 = vmul.f32 %v2490_v30, %v2490_v30 }
0x190a   :  { %v2497_v50 = vsel %vm39_vm0, %v2493_v36, 0.0 }
0x190b   :  { %2498 = vadd.xlane.f32.xlu0 %v2497_v50  ;;  %v2494_v35 = vsel %vm39_vm0, %v2492_v37, 0.0 }
0x190c   :  { %2495 = vadd.xlane.f32.xlu1 %v2494_v35 }
0x1998   :  { %v2499_v23 = vpop.xlane.xlu0 %2498 }
0x1999   :  { %v2501_v51 = vmul.f32 0.03125, %v2499_v23  ;;  %v2496_v52 = vpop.xlane.xlu1 %2495 }
0x199a   :  { %v2500_v53 = vmul.f32 0.03125, %v2496_v52 }
0x199b   :  { %v2503_v54 = vadd.f32 1e-12, %v2501_v51 }
0x199c   :  { %v2502_v58 = vadd.f32 1e-12, %v2500_v53 }
0x199d   :  { %3410 = vrsqrt.f32 %v2503_v54 }
0x199e   :  { %3412 = vrsqrt.f32 %v2502_v58 }
0x19a7   :  { %v3411_v60 = vpop.eup %3410 }
0x19a8   :  { %v3413_v44 = vpop.eup %3412  ;;  %v2507_v61 = vmul.f32 %v3411_v60, %v2491_v28 }
0x19a9   :  { %v2506_v63 = vmul.f32 %v3413_v44, %v2490_v30 }
0x19aa   :  { %v2513_v57 = vmul.f32 %v2511_v59, %v2507_v61 }
0x19ab   :  { %v2512_v56 = vmul.f32 %v2511_v59, %v2506_v63 }
0x19ac   :  { %v2519_v1 = vadd.f32 %v2517_v62, %v2513_v57 }
0x19ad   :  { %v2518_v10 = vadd.f32 %v2517_v62, %v2512_v56 }
0x19ae   :  { %v2531_v2 = vrot.slane %v2519_v1, 7 }
0x19b0   :  { %v2533_v24 = vsel %vm2532_vm4, %v2531_v2, %v2518_v10 }
0x19b1   :  { %3158 = vmatmul.mubr.msk.f32.vlgmr.msra.gmra.mrb[16].mxu0 %vm39_vm0, %v2533_v24 }
0x19b2   :  { %3315 = vmatpush3.bf16.msra.mxu0 %v3314_v3  ;;  %3192 = vmatprep.mubr.msk.f32.mxu0 %vm3441_vm1, %v3440_v41  ;;  %v2614_v41 = vld [vmem:[%s4075_s9 + $0x38] sm:$0xff] }
0x19b3   :  { %3316 = vmatprep.subr.bf16.mxu0 %v3447_v48  ;;  %v3323_v7 = vpack.c.bf16 %v2614_v41, %v2613_v20 }
0x19b6   :  { %3318 = vmatpush3.bf16.msra.mxu0 %v3317_v4 }
0x19b7   :  { %3319 = vmatprep.subr.bf16.mxu0 %v3447_v48 }
0x19ba   :  { %3321 = vmatpush3.bf16.msra.mxu0 %v3320_v21 }
0x19bb   :  { %3322 = vmatprep.subr.bf16.mxu0 %v3447_v48 }
0x19be   :  { %3324 = vmatpush3.bf16.msra.mxu0 %v3323_v7 }
0x19bf   :  { %3325 = vmatprep.subr.bf16.mxu0 %v3447_v48 }
0x19c2   :  { %3327 = vmatpush3.bf16.msra.mxu0 %v3326_v12 }
0x19c3   :  { %3328 = vmatprep.subr.bf16.mxu0 %v3447_v48 }
0x19c6   :  { %3330 = vmatpush3.bf16.msra.mxu0 %v3329_v15 }
0x19c7   :  { %3331 = vmatprep.subr.bf16.mxu0 %v3447_v48 }
0x19ca   :  { %3333 = vmatpush3.bf16.msra.mxu0 %v3332_v18 }
0x19cb   :  { %3334 = vmatprep.subr.bf16.mxu0 %v3447_v48 }
0x19ce   :  { %3336 = vmatpush3.bf16.msra.mxu0 %v3335_v43 }
0x1a84   :  { %v2602_v55 = vpop.f32.mrb[16].mxu0 }
0x1a85   :  { %v2603_v25 = vadd.f32 %v2794_v38, %v2602_v55  ;;  %v3159_v27 = vpop.f32.mrb[17].mxu0 }
0x1a87   :  { %3414 = vtanh.f32 %v2603_v25 }
0x1a91   :  { %v3415_v29 = vpop.eup %3414 }
0x1a92   :  { %3193 = vmatmul.mubr.f32.vlgmr.msra.gmra.mrb[18].mxu0 %v3415_v29 }
0x1b65   :  { %v2694_v40 = vpop.f32.mrb[18].mxu0 }
0x1b66   :  { %v2695_v32 = vadd.f32 %v2796_v31, %v2694_v40  ;;  %v3194_v33 = vpop.f32.mrb[19].mxu0 }
0x1b68   :  { %2698 = vst [vmem:[#allocation2] sm:$0x3] %v2695_v32 }
0x1b69   :  { %3427 = shalt.err (!%p3424_p4)
}
0x1b6a   :  { %s3428_s23 = scalar_lea.hbm %s4076_s10, 32 }
0x1b6b   :  { %p3429_p5 = scmp.ne.s32.totalorder %s4076_s10, %s3428_s23  ;;  %p3432_p6 = scmp.lt.u32.totalorder %s3428_s23, %s4076_s10 }
0x1b6d   :  { %p3434_p7 = pnand %p3432_p6, %p3429_p5 }
0x1b6f   :  { %3437 = shalt.err (!%p3434_p7)
}
0x1b70   :  { %2708 = dma.vmem_to_hbm [thread:$0]  %s2706_s20, 32, %s4076_s10, [#allocation3]  }
0x1b71   :  { %3438 = dma.done.wait [#allocation3], 32  }
0x1b72   :  { %3439 = vsyncadd [#allocation3], 4294967264 }
0x1b73   :  { %2712 = vsyncpa [#allocation3], 1 }

</bundles_post_ra>
